<compile_context>
chip_gen: v6e
topology: v6e:2x2x1
jax: 0.10.0
libtpu: 0.0.40
codegen_flags: <defaults>
</compile_context>

<pallas_src>
import functools

import jax
import jax.numpy as jnp
from jax.experimental import pallas as pl
from jax.experimental.pallas import tpu as pltpu


def _hswish(y):
    return y * jnp.clip(y + 3.0, 0.0, 6.0) * (1.0 / 6.0)


def _hsigmoid(y):
    return jnp.clip(y + 3.0, 0.0, 6.0) * (1.0 / 6.0)


# -----------------------------------------------------------------------------
# Fused encoder kernel.  One grid step == Nb batch images, everything in VMEM.
#
# Input p has rows (img, phase, ty) and lanes (tx, tap): the wrapper already
# ordered the stride-2 stem grid into the 4 phase planes the stride-2 depthwise
# needs, so the whole stem/expand runs as two lane-dense block-diagonal MXU
# matmuls and the depthwise only needs +/-1 shifts realized with
# slice + concat-of-zeros (no strided access, no VMEM scratch).
# -----------------------------------------------------------------------------
def _encoder_kernel(p_ref, w_stem_ref, b_stem_ref, w_exp_ref, b_exp_ref,
                    w_dw_ref, b_dw_ref, w_se1_ref, b_se1_ref, w_se2_ref,
                    b_se2_ref, w_ph_ref, b_ph_ref, o_ref, *,
                    nb, hp, c_exp, c_head):
    f32, bf16 = jnp.float32, jnp.bfloat16
    wide = hp * c_exp

    # ---- stem 3x3/s2 (BN folded) as ONE block-diag MXU matmul + h-swish -----
    x0 = p_ref[...].reshape(nb * 4 * hp, p_ref.shape[2])       # rows = (b,p,ty)
    s = jnp.dot(x0, w_stem_ref[...], preferred_element_type=f32)
    s = _hswish(s + b_stem_ref[...])                           # (M, hp*c_stem)

    # ---- expand 1x1 (block-diag, BN folded) + ReLU: bf16 in, f32 acc --------
    y = jnp.dot(s.astype(bf16), w_exp_ref[...], preferred_element_type=f32)
    y = jnp.maximum(y + b_exp_ref[...], 0.0)                   # (M, wide)

    # ---- depthwise 3x3 stride-2 (BN folded) + ReLU on lane-dense planes -----
    y4 = y.reshape(nb, 4, hp, wide)
    p00, p01, p10, p11 = y4[:, 0], y4[:, 1], y4[:, 2], y4[:, 3]
    wd = [w_dw_ref[j, :] for j in range(9)]                    # (wide,) rows

    def shx(v):   # v[.., tx-1, c], zero column at tx == 0 (lane shift by c_exp)
        return jnp.concatenate(
            [jnp.zeros((nb, hp, c_exp), f32), v[:, :, :wide - c_exp]], axis=2)

    def shy(v):   # v[.., ty-1, ..], zero row at ty == 0 (sublane shift)
        return jnp.concatenate(
            [jnp.zeros((nb, 1, wide), f32), v[:, :hp - 1, :]], axis=1)

    p01x = shx(p01)
    p11x = shx(p11)
    row_up = wd[1] * p10 + wd[0] * p11x + wd[2] * p11          # expanded row 2y-1
    acc = (wd[4] * p00 + wd[5] * p01 + wd[3] * p01x
           + wd[7] * p10 + wd[8] * p11 + wd[6] * p11x
           + shy(row_up))
    y2 = jnp.maximum(acc + b_dw_ref[...], 0.0)                 # (nb, hp, wide)

    # ---- squeeze-excite (spatial mean folded into FC1 weights at pack time) -
    rowsum = jnp.sum(y2, axis=1)                               # (nb, wide)
    se = jnp.dot(rowsum.astype(bf16), w_se1_ref[...],
                 preferred_element_type=f32)
    se = jnp.maximum(se + b_se1_ref[...], 0.0)                 # (nb, c_se)
    se = jnp.dot(se.astype(bf16), w_se2_ref[...],
                 preferred_element_type=f32)
    se = _hsigmoid(se + b_se2_ref[...])                        # (nb, c_exp)
    se_wide = jnp.concatenate([se] * hp, axis=-1)              # (nb, wide)
    y2 = y2 * se_wide[:, None, :]

    # ---- fused (project @ head) 1x1 (block-diag) + h-swish; lane-dense store
    y3 = jnp.dot(y2.reshape(nb * hp, wide).astype(bf16), w_ph_ref[...],
                 preferred_element_type=f32) + b_ph_ref[...]
    o_ref[...] = _hswish(y3).reshape(nb, hp, hp * c_head)


# -----------------------------------------------------------------------------
# Parameters: deterministic synthetic init, eval-mode BN folded into weights.
# -----------------------------------------------------------------------------
def _bn_fold(key, c):
    kg, kb = jax.random.split(key)
    gamma = 1.0 + 0.1 * jax.random.normal(kg, (c,), jnp.float32)
    beta = 0.1 * jax.random.normal(kb, (c,), jnp.float32)
    mean = jnp.zeros((c,), jnp.float32)
    var = jnp.ones((c,), jnp.float32)
    scale = gamma / jnp.sqrt(var + 1e-5)
    bias = beta - mean * scale
    return scale, bias


def init_params(factor=1.0, key=jax.random.PRNGKey(0)):
    c_in = 3
    c_stem = max(8, int(16 * factor))
    c_exp = max(8, int(32 * factor))
    c_out = max(8, int(16 * factor))
    c_se = max(8, c_exp // 4)
    c_head = max(8, int(64 * factor))
    keys = jax.random.split(key, 12)
    std = 0.3
    bf16 = jnp.bfloat16

    s_stem, b_stem = _bn_fold(keys[1], c_stem)
    w_stem = std * jax.random.normal(keys[0], (3, 3, c_in, c_stem), jnp.float32)
    w_stem = (w_stem * s_stem).reshape(9 * c_in, c_stem)        # BN folded

    s_exp, b_exp = _bn_fold(keys[3], c_exp)
    w_exp = std * jax.random.normal(keys[2], (c_stem, c_exp), jnp.float32) * s_exp

    s_dw, b_dw = _bn_fold(keys[5], c_exp)
    w_dw = (std * jax.random.normal(keys[4], (3, 3, c_exp), jnp.float32) * s_dw
            ).reshape(9, c_exp)

    w_se1 = std * jax.random.normal(keys[6], (c_exp, c_se), jnp.float32)
    w_se2 = std * jax.random.normal(keys[7], (c_se, c_exp), jnp.float32)

    s_proj, b_proj = _bn_fold(keys[9], c_out)
    w_proj = std * jax.random.normal(keys[8], (c_exp, c_out), jnp.float32) * s_proj

    s_head, b_head = _bn_fold(keys[11], c_head)
    w_head = std * jax.random.normal(keys[10], (c_out, c_head), jnp.float32) * s_head

    return {
        "w_stem": w_stem, "b_stem": b_stem.reshape(1, c_stem),
        "w_exp": w_exp.astype(bf16), "b_exp": b_exp.reshape(1, c_exp),
        "w_dw": w_dw, "b_dw": b_dw.reshape(1, c_exp),
        "w_se1": w_se1.astype(bf16), "b_se1": jnp.zeros((1, c_se), jnp.float32),
        "w_se2": w_se2.astype(bf16), "b_se2": jnp.zeros((1, c_exp), jnp.float32),
        "w_proj": w_proj.astype(bf16), "b_proj": b_proj.reshape(1, c_out),
        "w_head": w_head.astype(bf16), "b_head": b_head.reshape(1, c_head),
    }


def _pack_kernel_params(params, hp):
    """Kernel weight layout: block-diagonal / lane-tiled, proj@head folded."""
    f32, bf16 = jnp.float32, jnp.bfloat16
    eye = jnp.eye(hp, dtype=f32)

    def blk(w):                 # one copy of w per output lane-group tx
        return jnp.kron(eye, w)

    def tile_lanes(b):          # (1, C) -> (1, hp*C)
        return jnp.tile(b, (1, hp))

    w_stem = params["w_stem"].astype(f32)                       # (27, c_stem)
    w_exp = params["w_exp"].astype(f32)                         # (c_stem, c_exp)
    w_proj = params["w_proj"].astype(f32)                       # (c_exp, c_out)
    w_head = params["w_head"].astype(f32)                       # (c_out, c_head)
    w_ph = w_proj @ w_head                                      # exact fold (f32)
    b_ph = params["b_proj"] @ w_head + params["b_head"]         # (1, c_head)

    return {
        "w_stem": blk(w_stem),                                  # (hp*27, hp*c_stem) f32
        "b_stem": tile_lanes(params["b_stem"]),
        "w_exp": blk(w_exp).astype(bf16),                       # (hp*c_stem, hp*c_exp)
        "b_exp": tile_lanes(params["b_exp"]),
        "w_dw": jnp.tile(params["w_dw"], (1, hp)),              # (9, hp*c_exp) f32
        "b_dw": tile_lanes(params["b_dw"]),
        "w_se1": jnp.tile(params["w_se1"].astype(f32) / (hp * hp),
                          (hp, 1)).astype(bf16),                # pooling folded in
        "b_se1": params["b_se1"],
        "w_se2": params["w_se2"],
        "b_se2": params["b_se2"],
        "w_ph": blk(w_ph).astype(bf16),                         # (hp*c_exp, hp*c_head)
        "b_ph": tile_lanes(b_ph),
    }


# -----------------------------------------------------------------------------
# CNNEncoder.forward == MobileNetV3(factor)(x), one fused Pallas kernel.
# -----------------------------------------------------------------------------
def cnn_encoder_forward(params, x_nchw):
    n, c_in, h, w = x_nchw.shape
    assert c_in == 3 and h == w and h % 4 == 0
    hp, h2 = h // 4, h // 2
    c_stem = params["w_stem"].shape[1]
    c_exp = params["w_exp"].shape[1]
    c_se = params["w_se1"].shape[1]
    c_head = params["w_head"].shape[1]

    # batch block: largest divisor of n that is <= 8 (fills MXU rows and
    # amortizes per-step pipeline overhead; VMEM per step stays tiny even on
    # v7x's 64 MiB; for big batches grid length n//nb >= 2 feeds both TCs).
    nb = max(d for d in range(1, min(8, n) + 1) if n % d == 0)

    # ---- wrapper-side layout plumbing (pure XLA, tiny tensors) --------------
    # phase-ordered im2col of the stride-2 stem: rows (img, phase, ty),
    # lanes (tx, 9*c_in) so the kernel is matmul-only until the depthwise.
    x = jnp.transpose(x_nchw, (0, 2, 3, 1)).astype(jnp.float32)   # NHWC
    xp = jnp.pad(x, ((0, 0), (1, 1), (1, 1), (0, 0)))
    taps = [xp[:, dy:dy + 2 * h2:2, dx:dx + 2 * h2:2, :]
            for dy in range(3) for dx in range(3)]                # 9 x (n,h2,h2,3)
    p = jnp.stack(taps, axis=3).reshape(n, h2, h2, 9 * c_in)
    p = p.reshape(n, hp, 2, hp, 2, 9 * c_in).transpose(0, 2, 4, 1, 3, 5)
    p = p.reshape(n, 4 * hp, hp * 9 * c_in)                       # (n, 4hp, hp*27)

    kp = _pack_kernel_params(params, hp)
    kernel = functools.partial(_encoder_kernel, nb=nb, hp=hp,
                               c_exp=c_exp, c_head=c_head)
    full = lambda i: (0, 0)

    out = pl.pallas_call(
        kernel,
        out_shape=jax.ShapeDtypeStruct((n, hp, hp * c_head), jnp.float32),
        grid=(n // nb,),
        in_specs=[
            pl.BlockSpec((nb, 4 * hp, hp * 9 * c_in), lambda i: (i, 0, 0)),
            pl.BlockSpec((hp * 9 * c_in, hp * c_stem), full),
            pl.BlockSpec((1, hp * c_stem), full),
            pl.BlockSpec((hp * c_stem, hp * c_exp), full),
            pl.BlockSpec((1, hp * c_exp), full),
            pl.BlockSpec((9, hp * c_exp), full),
            pl.BlockSpec((1, hp * c_exp), full),
            pl.BlockSpec((hp * c_exp, c_se), full),
            pl.BlockSpec((1, c_se), full),
            pl.BlockSpec((c_se, c_exp), full),
            pl.BlockSpec((1, c_exp), full),
            pl.BlockSpec((hp * c_exp, hp * c_head), full),
            pl.BlockSpec((1, hp * c_head), full),
        ],
        out_specs=pl.BlockSpec((nb, hp, hp * c_head), lambda i: (i, 0, 0)),
        compiler_params=pltpu.CompilerParams(
            dimension_semantics=("parallel",)),
    )(p, kp["w_stem"], kp["b_stem"], kp["w_exp"], kp["b_exp"],
      kp["w_dw"], kp["b_dw"], kp["w_se1"], kp["b_se1"], kp["w_se2"],
      kp["b_se2"], kp["w_ph"], kp["b_ph"])

    out = out.reshape(n, hp, hp, c_head)                # lanes were (tx, c_head)
    return jnp.transpose(out, (0, 3, 1, 2))             # NCHW


# -----------------------------------------------------------------------------
# Pure-JAX reference (same folded weights) for numerics validation.
# -----------------------------------------------------------------------------
def _reference_forward(params, x_nchw):
    f32 = jnp.float32
    x = jnp.transpose(x_nchw, (0, 2, 3, 1)).astype(f32)
    c_stem = params["w_stem"].shape[1]
    c_exp = params["w_dw"].shape[1]
    w_stem = params["w_stem"].astype(f32).reshape(3, 3, 3, c_stem)
    y = jax.lax.conv_general_dilated(
        x, w_stem, window_strides=(2, 2), padding=((1, 1), (1, 1)),
        dimension_numbers=("NHWC", "HWIO", "NHWC"))
    y = _hswish(y + params["b_stem"].reshape(1, 1, 1, -1))
    y = jnp.maximum(jnp.einsum("nhwc,cd->nhwd", y, params["w_exp"].astype(f32))
                    + params["b_exp"].reshape(1, 1, 1, -1), 0.0)
    w_dw = params["w_dw"].astype(f32).reshape(3, 3, 1, c_exp)
    y = jax.lax.conv_general_dilated(
        y, w_dw, window_strides=(2, 2), padding=((1, 1), (1, 1)),
        dimension_numbers=("NHWC", "HWIO", "NHWC"), feature_group_count=c_exp)
    y = jnp.maximum(y + params["b_dw"].reshape(1, 1, 1, -1), 0.0)
    pooled = jnp.mean(y, axis=(1, 2))
    se = jnp.maximum(pooled @ params["w_se1"].astype(f32) + params["b_se1"], 0.0)
    se = _hsigmoid(se @ params["w_se2"].astype(f32) + params["b_se2"])
    y = y * se[:, None, None, :]
    y = (jnp.einsum("nhwc,cd->nhwd", y, params["w_proj"].astype(f32))
         + params["b_proj"].reshape(1, 1, 1, -1))
    y = _hswish(jnp.einsum("nhwc,cd->nhwd", y, params["w_head"].astype(f32))
                + params["b_head"].reshape(1, 1, 1, -1))
    return jnp.transpose(y, (0, 3, 1, 2))


if __name__ == "__main__":
    key = jax.random.PRNGKey(0)
    kx, kp = jax.random.split(key)
    x = jax.random.normal(kx, (2, 3, 32, 32), jnp.float32)           # NCHW
    params = init_params(factor=1.0, key=kp)

    fwd = jax.jit(cnn_encoder_forward)
    out = fwd(params, x)
    jax.block_until_ready(out)
    assert out.shape == (2, 64, 8, 8), out.shape
    assert bool(jnp.all(jnp.isfinite(out)))

    ref = _reference_forward(params, x)
    max_err = float(jnp.max(jnp.abs(out - ref)))
    assert jnp.allclose(out, ref, rtol=5e-2, atol=2e-2), max_err
    print("KERNEL_OK")
</pallas_src>

<mosaic_0001>
module attributes {stable_mosaic.version = 11 : i64} {
  func.func @_encoder_kernel(%arg0: i32, %arg1: memref<2x32x216xf32, #tpu.memory_space<vmem>>, %arg2: memref<216x128xf32, #tpu.memory_space<vmem>>, %arg3: memref<1x128xf32, #tpu.memory_space<vmem>>, %arg4: memref<128x256xbf16, #tpu.memory_space<vmem>>, %arg5: memref<1x256xf32, #tpu.memory_space<vmem>>, %arg6: memref<9x256xf32, #tpu.memory_space<vmem>>, %arg7: memref<1x256xf32, #tpu.memory_space<vmem>>, %arg8: memref<256x8xbf16, #tpu.memory_space<vmem>>, %arg9: memref<1x8xf32, #tpu.memory_space<vmem>>, %arg10: memref<8x32xbf16, #tpu.memory_space<vmem>>, %arg11: memref<1x32xf32, #tpu.memory_space<vmem>>, %arg12: memref<256x512xbf16, #tpu.memory_space<vmem>>, %arg13: memref<1x512xf32, #tpu.memory_space<vmem>>, %arg14: memref<2x8x512xf32, #tpu.memory_space<vmem>>) attributes {dimension_semantics = [#tpu.dimension_semantics<parallel>], iteration_bounds = array<i64: 1>, scalar_prefetch = 0 : i64, scratch_operands = 0 : i64, tpu.core_type = #tpu.core_type<tc>, window_params = [{transform_indices = @transform_0, window_bounds = array<i64: 2, 32, 216>}, {pipeline_mode = #tpu.pipeline_mode<synchronous>, transform_indices = @transform_1, window_bounds = array<i64: 216, 128>}, {pipeline_mode = #tpu.pipeline_mode<synchronous>, transform_indices = @transform_2, window_bounds = array<i64: 1, 128>}, {pipeline_mode = #tpu.pipeline_mode<synchronous>, transform_indices = @transform_3, window_bounds = array<i64: 128, 256>}, {pipeline_mode = #tpu.pipeline_mode<synchronous>, transform_indices = @transform_4, window_bounds = array<i64: 1, 256>}, {pipeline_mode = #tpu.pipeline_mode<synchronous>, transform_indices = @transform_5, window_bounds = array<i64: 9, 256>}, {pipeline_mode = #tpu.pipeline_mode<synchronous>, transform_indices = @transform_6, window_bounds = array<i64: 1, 256>}, {pipeline_mode = #tpu.pipeline_mode<synchronous>, transform_indices = @transform_7, window_bounds = array<i64: 256, 8>}, {pipeline_mode = #tpu.pipeline_mode<synchronous>, transform_indices = @transform_8, window_bounds = array<i64: 1, 8>}, {pipeline_mode = #tpu.pipeline_mode<synchronous>, transform_indices = @transform_9, window_bounds = array<i64: 8, 32>}, {pipeline_mode = #tpu.pipeline_mode<synchronous>, transform_indices = @transform_10, window_bounds = array<i64: 1, 32>}, {pipeline_mode = #tpu.pipeline_mode<synchronous>, transform_indices = @transform_11, window_bounds = array<i64: 256, 512>}, {pipeline_mode = #tpu.pipeline_mode<synchronous>, transform_indices = @transform_12, window_bounds = array<i64: 1, 512>}, {transform_indices = @transform_13, window_bounds = array<i64: 2, 8, 512>}]} {
    %c0 = arith.constant 0 : index
    %c0_0 = arith.constant 0 : index
    %c0_1 = arith.constant 0 : index
    %0 = vector.load %arg1[%c0, %c0_0, %c0_1] : memref<2x32x216xf32, #tpu.memory_space<vmem>>, vector<2x32x216xf32>
    %1 = vector.shape_cast %0 : vector<2x32x216xf32> to vector<64x216xf32>
    %c0_2 = arith.constant 0 : index
    %c0_3 = arith.constant 0 : index
    %2 = vector.load %arg2[%c0_2, %c0_3] : memref<216x128xf32, #tpu.memory_space<vmem>>, vector<216x128xf32>
    %cst = arith.constant dense<0.000000e+00> : vector<64x128xf32>
    %3 = tpu.matmul %1, %2, %cst {dimension_numbers = #tpu.dot_dimension_numbers<[1], [0], [0], [1], [0, 0, 1, 1], [], []>} : vector<64x216xf32>, vector<216x128xf32>, vector<64x128xf32> -> vector<64x128xf32>
    %c0_4 = arith.constant 0 : index
    %c0_5 = arith.constant 0 : index
    %4 = vector.load %arg3[%c0_4, %c0_5] : memref<1x128xf32, #tpu.memory_space<vmem>>, vector<1x128xf32>
    %5 = vector.broadcast %4 : vector<1x128xf32> to vector<64x128xf32>
    %6 = arith.addf %3, %5 : vector<64x128xf32>
    %cst_6 = arith.constant 3.000000e+00 : f32
    %7 = vector.broadcast %cst_6 : f32 to vector<64x128xf32>
    %8 = arith.addf %6, %7 : vector<64x128xf32>
    %cst_7 = arith.constant 0.000000e+00 : f32
    %cst_8 = arith.constant 6.000000e+00 : f32
    %9 = vector.broadcast %cst_7 : f32 to vector<64x128xf32>
    %10 = arith.maximumf %9, %8 : vector<64x128xf32>
    %11 = vector.broadcast %cst_8 : f32 to vector<64x128xf32>
    %12 = arith.minimumf %11, %10 : vector<64x128xf32>
    %13 = arith.mulf %6, %12 : vector<64x128xf32>
    %cst_9 = arith.constant 0.166666672 : f32
    %14 = vector.broadcast %cst_9 : f32 to vector<64x128xf32>
    %15 = arith.mulf %13, %14 : vector<64x128xf32>
    %16 = arith.truncf %15 : vector<64x128xf32> to vector<64x128xbf16>
    %c0_10 = arith.constant 0 : index
    %c0_11 = arith.constant 0 : index
    %17 = vector.load %arg4[%c0_10, %c0_11] : memref<128x256xbf16, #tpu.memory_space<vmem>>, vector<128x256xbf16>
    %cst_12 = arith.constant dense<0.000000e+00> : vector<64x256xf32>
    %18 = tpu.matmul %16, %17, %cst_12 {dimension_numbers = #tpu.dot_dimension_numbers<[1], [0], [0], [1], [0, 0, 1, 1], [], []>} : vector<64x128xbf16>, vector<128x256xbf16>, vector<64x256xf32> -> vector<64x256xf32>
    %c0_13 = arith.constant 0 : index
    %c0_14 = arith.constant 0 : index
    %19 = vector.load %arg5[%c0_13, %c0_14] : memref<1x256xf32, #tpu.memory_space<vmem>>, vector<1x256xf32>
    %20 = vector.broadcast %19 : vector<1x256xf32> to vector<64x256xf32>
    %21 = arith.addf %18, %20 : vector<64x256xf32>
    %cst_15 = arith.constant 0.000000e+00 : f32
    %22 = vector.broadcast %cst_15 : f32 to vector<64x256xf32>
    %23 = arith.maximumf %21, %22 : vector<64x256xf32>
    %24 = vector.shape_cast %23 : vector<64x256xf32> to vector<2x4x8x256xf32>
    %25 = vector.extract_strided_slice %24 {offsets = [0, 0, 0, 0], sizes = [2, 1, 8, 256], strides = [1, 1, 1, 1]} : vector<2x4x8x256xf32> to vector<2x1x8x256xf32>
    %26 = vector.shape_cast %25 : vector<2x1x8x256xf32> to vector<2x8x256xf32>
    %27 = vector.extract_strided_slice %24 {offsets = [0, 1, 0, 0], sizes = [2, 1, 8, 256], strides = [1, 1, 1, 1]} : vector<2x4x8x256xf32> to vector<2x1x8x256xf32>
    %28 = vector.shape_cast %27 : vector<2x1x8x256xf32> to vector<2x8x256xf32>
    %29 = vector.extract_strided_slice %24 {offsets = [0, 2, 0, 0], sizes = [2, 1, 8, 256], strides = [1, 1, 1, 1]} : vector<2x4x8x256xf32> to vector<2x1x8x256xf32>
    %30 = vector.shape_cast %29 : vector<2x1x8x256xf32> to vector<2x8x256xf32>
    %31 = vector.extract_strided_slice %24 {offsets = [0, 3, 0, 0], sizes = [2, 1, 8, 256], strides = [1, 1, 1, 1]} : vector<2x4x8x256xf32> to vector<2x1x8x256xf32>
    %32 = vector.shape_cast %31 : vector<2x1x8x256xf32> to vector<2x8x256xf32>
    %c0_16 = arith.constant 0 : index
    %c0_17 = arith.constant 0 : index
    %33 = vector.load %arg6[%c0_16, %c0_17] : memref<9x256xf32, #tpu.memory_space<vmem>>, vector<1x256xf32>
    %34 = vector.shape_cast %33 : vector<1x256xf32> to vector<256xf32>
    %c1 = arith.constant 1 : index
    %c0_18 = arith.constant 0 : index
    %35 = vector.load %arg6[%c1, %c0_18] : memref<9x256xf32, #tpu.memory_space<vmem>>, vector<1x256xf32>
    %36 = vector.shape_cast %35 : vector<1x256xf32> to vector<256xf32>
    %c2 = arith.constant 2 : index
    %c0_19 = arith.constant 0 : index
    %37 = vector.load %arg6[%c2, %c0_19] : memref<9x256xf32, #tpu.memory_space<vmem>>, vector<1x256xf32>
    %38 = vector.shape_cast %37 : vector<1x256xf32> to vector<256xf32>
    %c3 = arith.constant 3 : index
    %c0_20 = arith.constant 0 : index
    %39 = vector.load %arg6[%c3, %c0_20] : memref<9x256xf32, #tpu.memory_space<vmem>>, vector<1x256xf32>
    %40 = vector.shape_cast %39 : vector<1x256xf32> to vector<256xf32>
    %c4 = arith.constant 4 : index
    %c0_21 = arith.constant 0 : index
    %41 = vector.load %arg6[%c4, %c0_21] : memref<9x256xf32, #tpu.memory_space<vmem>>, vector<1x256xf32>
    %42 = vector.shape_cast %41 : vector<1x256xf32> to vector<256xf32>
    %c5 = arith.constant 5 : index
    %c0_22 = arith.constant 0 : index
    %43 = vector.load %arg6[%c5, %c0_22] : memref<9x256xf32, #tpu.memory_space<vmem>>, vector<1x256xf32>
    %44 = vector.shape_cast %43 : vector<1x256xf32> to vector<256xf32>
    %c6 = arith.constant 6 : index
    %c0_23 = arith.constant 0 : index
    %45 = vector.load %arg6[%c6, %c0_23] : memref<9x256xf32, #tpu.memory_space<vmem>>, vector<1x256xf32>
    %46 = vector.shape_cast %45 : vector<1x256xf32> to vector<256xf32>
    %c7 = arith.constant 7 : index
    %c0_24 = arith.constant 0 : index
    %47 = vector.load %arg6[%c7, %c0_24] : memref<9x256xf32, #tpu.memory_space<vmem>>, vector<1x256xf32>
    %48 = vector.shape_cast %47 : vector<1x256xf32> to vector<256xf32>
    %c8 = arith.constant 8 : index
    %c0_25 = arith.constant 0 : index
    %49 = vector.load %arg6[%c8, %c0_25] : memref<9x256xf32, #tpu.memory_space<vmem>>, vector<1x256xf32>
    %50 = vector.shape_cast %49 : vector<1x256xf32> to vector<256xf32>
    %cst_26 = arith.constant 0.000000e+00 : f32
    %51 = vector.broadcast %cst_26 : f32 to vector<2x8x32xf32>
    %52 = vector.extract_strided_slice %28 {offsets = [0, 0, 0], sizes = [2, 8, 224], strides = [1, 1, 1]} : vector<2x8x256xf32> to vector<2x8x224xf32>
    %53 = tpu.concatenate %51, %52 in 2 : vector<2x8x32xf32>, vector<2x8x224xf32> -> vector<2x8x256xf32>
    %cst_27 = arith.constant 0.000000e+00 : f32
    %54 = vector.broadcast %cst_27 : f32 to vector<2x8x32xf32>
    %55 = vector.extract_strided_slice %32 {offsets = [0, 0, 0], sizes = [2, 8, 224], strides = [1, 1, 1]} : vector<2x8x256xf32> to vector<2x8x224xf32>
    %56 = tpu.concatenate %54, %55 in 2 : vector<2x8x32xf32>, vector<2x8x224xf32> -> vector<2x8x256xf32>
    %57 = vector.shape_cast %36 : vector<256xf32> to vector<1x1x256xf32>
    %58 = vector.broadcast %57 : vector<1x1x256xf32> to vector<2x8x256xf32>
    %59 = arith.mulf %58, %30 : vector<2x8x256xf32>
    %60 = vector.shape_cast %34 : vector<256xf32> to vector<1x1x256xf32>
    %61 = vector.broadcast %60 : vector<1x1x256xf32> to vector<2x8x256xf32>
    %62 = arith.mulf %61, %56 : vector<2x8x256xf32>
    %63 = arith.addf %59, %62 : vector<2x8x256xf32>
    %64 = vector.shape_cast %38 : vector<256xf32> to vector<1x1x256xf32>
    %65 = vector.broadcast %64 : vector<1x1x256xf32> to vector<2x8x256xf32>
    %66 = arith.mulf %65, %32 : vector<2x8x256xf32>
    %67 = arith.addf %63, %66 : vector<2x8x256xf32>
    %68 = vector.shape_cast %42 : vector<256xf32> to vector<1x1x256xf32>
    %69 = vector.broadcast %68 : vector<1x1x256xf32> to vector<2x8x256xf32>
    %70 = arith.mulf %69, %26 : vector<2x8x256xf32>
    %71 = vector.shape_cast %44 : vector<256xf32> to vector<1x1x256xf32>
    %72 = vector.broadcast %71 : vector<1x1x256xf32> to vector<2x8x256xf32>
    %73 = arith.mulf %72, %28 : vector<2x8x256xf32>
    %74 = arith.addf %70, %73 : vector<2x8x256xf32>
    %75 = vector.shape_cast %40 : vector<256xf32> to vector<1x1x256xf32>
    %76 = vector.broadcast %75 : vector<1x1x256xf32> to vector<2x8x256xf32>
    %77 = arith.mulf %76, %53 : vector<2x8x256xf32>
    %78 = arith.addf %74, %77 : vector<2x8x256xf32>
    %79 = vector.shape_cast %48 : vector<256xf32> to vector<1x1x256xf32>
    %80 = vector.broadcast %79 : vector<1x1x256xf32> to vector<2x8x256xf32>
    %81 = arith.mulf %80, %30 : vector<2x8x256xf32>
    %82 = arith.addf %78, %81 : vector<2x8x256xf32>
    %83 = vector.shape_cast %50 : vector<256xf32> to vector<1x1x256xf32>
    %84 = vector.broadcast %83 : vector<1x1x256xf32> to vector<2x8x256xf32>
    %85 = arith.mulf %84, %32 : vector<2x8x256xf32>
    %86 = arith.addf %82, %85 : vector<2x8x256xf32>
    %87 = vector.shape_cast %46 : vector<256xf32> to vector<1x1x256xf32>
    %88 = vector.broadcast %87 : vector<1x1x256xf32> to vector<2x8x256xf32>
    %89 = arith.mulf %88, %56 : vector<2x8x256xf32>
    %90 = arith.addf %86, %89 : vector<2x8x256xf32>
    %cst_28 = arith.constant 0.000000e+00 : f32
    %91 = vector.broadcast %cst_28 : f32 to vector<2x1x256xf32>
    %92 = vector.extract_strided_slice %67 {offsets = [0, 0, 0], sizes = [2, 7, 256], strides = [1, 1, 1]} : vector<2x8x256xf32> to vector<2x7x256xf32>
    %93 = tpu.concatenate %91, %92 in 1 : vector<2x1x256xf32>, vector<2x7x256xf32> -> vector<2x8x256xf32>
    %94 = arith.addf %90, %93 : vector<2x8x256xf32>
    %c0_29 = arith.constant 0 : index
    %c0_30 = arith.constant 0 : index
    %95 = vector.load %arg7[%c0_29, %c0_30] : memref<1x256xf32, #tpu.memory_space<vmem>>, vector<1x256xf32>
    %96 = vector.shape_cast %95 : vector<1x256xf32> to vector<1x1x256xf32>
    %97 = vector.broadcast %96 : vector<1x1x256xf32> to vector<2x8x256xf32>
    %98 = arith.addf %94, %97 : vector<2x8x256xf32>
    %cst_31 = arith.constant 0.000000e+00 : f32
    %99 = vector.broadcast %cst_31 : f32 to vector<2x8x256xf32>
    %100 = arith.maximumf %98, %99 : vector<2x8x256xf32>
    %cst_32 = arith.constant dense<0.000000e+00> : vector<2x256xf32>
    %101 = vector.multi_reduction <add>, %100, %cst_32 [1] : vector<2x8x256xf32> to vector<2x256xf32>
    %102 = arith.truncf %101 : vector<2x256xf32> to vector<2x256xbf16>
    %c0_33 = arith.constant 0 : index
    %c0_34 = arith.constant 0 : index
    %103 = vector.load %arg8[%c0_33, %c0_34] : memref<256x8xbf16, #tpu.memory_space<vmem>>, vector<256x8xbf16>
    %cst_35 = arith.constant dense<0.000000e+00> : vector<2x8xf32>
    %104 = tpu.matmul %102, %103, %cst_35 {dimension_numbers = #tpu.dot_dimension_numbers<[1], [0], [0], [1], [0, 0, 1, 1], [], []>} : vector<2x256xbf16>, vector<256x8xbf16>, vector<2x8xf32> -> vector<2x8xf32>
    %c0_36 = arith.constant 0 : index
    %c0_37 = arith.constant 0 : index
    %105 = vector.load %arg9[%c0_36, %c0_37] : memref<1x8xf32, #tpu.memory_space<vmem>>, vector<1x8xf32>
    %106 = vector.broadcast %105 : vector<1x8xf32> to vector<2x8xf32>
    %107 = arith.addf %104, %106 : vector<2x8xf32>
    %cst_38 = arith.constant 0.000000e+00 : f32
    %108 = vector.broadcast %cst_38 : f32 to vector<2x8xf32>
    %109 = arith.maximumf %107, %108 : vector<2x8xf32>
    %110 = arith.truncf %109 : vector<2x8xf32> to vector<2x8xbf16>
    %c0_39 = arith.constant 0 : index
    %c0_40 = arith.constant 0 : index
    %111 = vector.load %arg10[%c0_39, %c0_40] : memref<8x32xbf16, #tpu.memory_space<vmem>>, vector<8x32xbf16>
    %cst_41 = arith.constant dense<0.000000e+00> : vector<2x32xf32>
    %112 = tpu.matmul %110, %111, %cst_41 {dimension_numbers = #tpu.dot_dimension_numbers<[1], [0], [0], [1], [0, 0, 1, 1], [], []>} : vector<2x8xbf16>, vector<8x32xbf16>, vector<2x32xf32> -> vector<2x32xf32>
    %c0_42 = arith.constant 0 : index
    %c0_43 = arith.constant 0 : index
    %113 = vector.load %arg11[%c0_42, %c0_43] : memref<1x32xf32, #tpu.memory_space<vmem>>, vector<1x32xf32>
    %114 = vector.broadcast %113 : vector<1x32xf32> to vector<2x32xf32>
    %115 = arith.addf %112, %114 : vector<2x32xf32>
    %cst_44 = arith.constant 3.000000e+00 : f32
    %116 = vector.broadcast %cst_44 : f32 to vector<2x32xf32>
    %117 = arith.addf %115, %116 : vector<2x32xf32>
    %cst_45 = arith.constant 0.000000e+00 : f32
    %cst_46 = arith.constant 6.000000e+00 : f32
    %118 = vector.broadcast %cst_45 : f32 to vector<2x32xf32>
    %119 = arith.maximumf %118, %117 : vector<2x32xf32>
    %120 = vector.broadcast %cst_46 : f32 to vector<2x32xf32>
    %121 = arith.minimumf %120, %119 : vector<2x32xf32>
    %cst_47 = arith.constant 0.166666672 : f32
    %122 = vector.broadcast %cst_47 : f32 to vector<2x32xf32>
    %123 = arith.mulf %121, %122 : vector<2x32xf32>
    %124 = tpu.concatenate %123, %123, %123, %123, %123, %123, %123, %123 in 1 : vector<2x32xf32>, vector<2x32xf32>, vector<2x32xf32>, vector<2x32xf32>, vector<2x32xf32>, vector<2x32xf32>, vector<2x32xf32>, vector<2x32xf32> -> vector<2x256xf32>
    %125 = vector.shape_cast %124 : vector<2x256xf32> to vector<2x1x256xf32>
    %126 = vector.broadcast %125 : vector<2x1x256xf32> to vector<2x8x256xf32>
    %127 = arith.mulf %100, %126 : vector<2x8x256xf32>
    %128 = vector.shape_cast %127 : vector<2x8x256xf32> to vector<16x256xf32>
    %129 = arith.truncf %128 : vector<16x256xf32> to vector<16x256xbf16>
    %c0_48 = arith.constant 0 : index
    %c0_49 = arith.constant 0 : index
    %130 = vector.load %arg12[%c0_48, %c0_49] : memref<256x512xbf16, #tpu.memory_space<vmem>>, vector<256x512xbf16>
    %cst_50 = arith.constant dense<0.000000e+00> : vector<16x512xf32>
    %131 = tpu.matmul %129, %130, %cst_50 {dimension_numbers = #tpu.dot_dimension_numbers<[1], [0], [0], [1], [0, 0, 1, 1], [], []>} : vector<16x256xbf16>, vector<256x512xbf16>, vector<16x512xf32> -> vector<16x512xf32>
    %c0_51 = arith.constant 0 : index
    %c0_52 = arith.constant 0 : index
    %132 = vector.load %arg13[%c0_51, %c0_52] : memref<1x512xf32, #tpu.memory_space<vmem>>, vector<1x512xf32>
    %133 = vector.broadcast %132 : vector<1x512xf32> to vector<16x512xf32>
    %134 = arith.addf %131, %133 : vector<16x512xf32>
    %cst_53 = arith.constant 3.000000e+00 : f32
    %135 = vector.broadcast %cst_53 : f32 to vector<16x512xf32>
    %136 = arith.addf %134, %135 : vector<16x512xf32>
    %cst_54 = arith.constant 0.000000e+00 : f32
    %cst_55 = arith.constant 6.000000e+00 : f32
    %137 = vector.broadcast %cst_54 : f32 to vector<16x512xf32>
    %138 = arith.maximumf %137, %136 : vector<16x512xf32>
    %139 = vector.broadcast %cst_55 : f32 to vector<16x512xf32>
    %140 = arith.minimumf %139, %138 : vector<16x512xf32>
    %141 = arith.mulf %134, %140 : vector<16x512xf32>
    %cst_56 = arith.constant 0.166666672 : f32
    %142 = vector.broadcast %cst_56 : f32 to vector<16x512xf32>
    %143 = arith.mulf %141, %142 : vector<16x512xf32>
    %144 = vector.shape_cast %143 : vector<16x512xf32> to vector<2x8x512xf32>
    %c0_57 = arith.constant 0 : index
    %c0_58 = arith.constant 0 : index
    %c0_59 = arith.constant 0 : index
    %145 = vector.load %arg14[%c0_57, %c0_58, %c0_59] : memref<2x8x512xf32, #tpu.memory_space<vmem>>, vector<2x8x512xf32>
    tpu.vector_store %arg14[%c0_57, %c0_58, %c0_59], %144 {strides = array<i32>} : memref<2x8x512xf32, #tpu.memory_space<vmem>>, vector<2x8x512xf32>,
    return
  }
  func.func @transform_0(%arg0: i32) -> (i32, i32, i32) {
    %c0_i32 = arith.constant 0 : i32
    %c0_i32_0 = arith.constant 0 : i32
    %c0_i32_1 = arith.constant 0 : i32
    return %arg0, %c0_i32, %c0_i32_0 : i32, i32, i32
  }
  func.func @transform_1(%arg0: i32) -> (i32, i32) {
    %c0_i32 = arith.constant 0 : i32
    %c0_i32_0 = arith.constant 0 : i32
    %c0_i32_1 = arith.constant 0 : i32
    return %c0_i32, %c0_i32_0 : i32, i32
  }
  func.func @transform_2(%arg0: i32) -> (i32, i32) {
    %c0_i32 = arith.constant 0 : i32
    %c0_i32_0 = arith.constant 0 : i32
    %c0_i32_1 = arith.constant 0 : i32
    return %c0_i32, %c0_i32_0 : i32, i32
  }
  func.func @transform_3(%arg0: i32) -> (i32, i32) {
    %c0_i32 = arith.constant 0 : i32
    %c0_i32_0 = arith.constant 0 : i32
    %c0_i32_1 = arith.constant 0 : i32
    return %c0_i32, %c0_i32_0 : i32, i32
  }
  func.func @transform_4(%arg0: i32) -> (i32, i32) {
    %c0_i32 = arith.constant 0 : i32
    %c0_i32_0 = arith.constant 0 : i32
    %c0_i32_1 = arith.constant 0 : i32
    return %c0_i32, %c0_i32_0 : i32, i32
  }
  func.func @transform_5(%arg0: i32) -> (i32, i32) {
    %c0_i32 = arith.constant 0 : i32
    %c0_i32_0 = arith.constant 0 : i32
    %c0_i32_1 = arith.constant 0 : i32
    return %c0_i32, %c0_i32_0 : i32, i32
  }
  func.func @transform_6(%arg0: i32) -> (i32, i32) {
    %c0_i32 = arith.constant 0 : i32
    %c0_i32_0 = arith.constant 0 : i32
    %c0_i32_1 = arith.constant 0 : i32
    return %c0_i32, %c0_i32_0 : i32, i32
  }
  func.func @transform_7(%arg0: i32) -> (i32, i32) {
    %c0_i32 = arith.constant 0 : i32
    %c0_i32_0 = arith.constant 0 : i32
    %c0_i32_1 = arith.constant 0 : i32
    return %c0_i32, %c0_i32_0 : i32, i32
  }
  func.func @transform_8(%arg0: i32) -> (i32, i32) {
    %c0_i32 = arith.constant 0 : i32
    %c0_i32_0 = arith.constant 0 : i32
    %c0_i32_1 = arith.constant 0 : i32
    return %c0_i32, %c0_i32_0 : i32, i32
  }
  func.func @transform_9(%arg0: i32) -> (i32, i32) {
    %c0_i32 = arith.constant 0 : i32
    %c0_i32_0 = arith.constant 0 : i32
    %c0_i32_1 = arith.constant 0 : i32
    return %c0_i32, %c0_i32_0 : i32, i32
  }
  func.func @transform_10(%arg0: i32) -> (i32, i32) {
    %c0_i32 = arith.constant 0 : i32
    %c0_i32_0 = arith.constant 0 : i32
    %c0_i32_1 = arith.constant 0 : i32
    return %c0_i32, %c0_i32_0 : i32, i32
  }
  func.func @transform_11(%arg0: i32) -> (i32, i32) {
    %c0_i32 = arith.constant 0 : i32
    %c0_i32_0 = arith.constant 0 : i32
    %c0_i32_1 = arith.constant 0 : i32
    return %c0_i32, %c0_i32_0 : i32, i32
  }
  func.func @transform_12(%arg0: i32) -> (i32, i32) {
    %c0_i32 = arith.constant 0 : i32
    %c0_i32_0 = arith.constant 0 : i32
    %c0_i32_1 = arith.constant 0 : i32
    return %c0_i32, %c0_i32_0 : i32, i32
  }
  func.func @transform_13(%arg0: i32) -> (i32, i32, i32) {
    %c0_i32 = arith.constant 0 : i32
    %c0_i32_0 = arith.constant 0 : i32
    %c0_i32_1 = arith.constant 0 : i32
    return %arg0, %c0_i32, %c0_i32_0 : i32, i32, i32
  }
}

</mosaic_0001>

<bundles_post_ra>
// kernel: tile.44
= control target key start
LH: loop header
LB: loop body
LE: loop exit
PB: predicated region body
PF: predicated region fallthrough
CT: control target
= control target key end

     0   :  { %vm32_vm0 = vcmask 1047556   ;;  %s50_s6 = smov 3  ;;  %s149_s15 = smov 96   ;;  %vm3_vm1 = vcmask 261120   ;;  %vm36_vm2 = vcmask 1048320   ;;  %vm65_vm3 = vcmask 785920   ;;  %s285_s0 = inlined_call_operand.vmem [shape: f32[9,8,32], index: 0, kind: input, shape index: {}]   ;;  %s286_s1 = inlined_call_operand.vmem [shape: f32[9,256], index: 1, kind: output, shape index: {}]  }
   0x1   :  { %v125_v0 = vld [vmem:[%s285_s0 + $0x3] ss:$8 sm:$0xf]   ;;  %v127_v4 = vld [vmem:[%s285_s0 + $0x7] ss:$8 sm:$0xf]  }
   0x2   :  { %v126_v1 = vld [vmem:[%s285_s0 + $0x3] ss:$8 sm:$0xf0]   ;;  %v128_v5 = vld [vmem:[%s285_s0 + $0x7] ss:$8 sm:$0xf0]  }
   0x3   :  { %v33_v2 = vsel %vm32_vm0, %v126_v1, %v125_v0  ;;  %v130_v3 = vld [vmem:[%s285_s0 + $0x43] ss:$4 sm:%s50_s6]   ;;  %v132_v6 = vld [vmem:[%s285_s0 + $0x2] ss:$8 sm:$0xf]   ;;  %v43_v7 = vsel %vm32_vm0, %v128_v5, %v127_v4  ;;  %s79_s26 = smov 3 }
   0x4   :  { %34 = vrot.lane.b32.xlu0 %v33_v2, %s149_s15  ;;  %52 = vrot.lane.b32.xlu1 %v130_v3, %s149_s15  ;;  %v133_v8 = vld [vmem:[%s285_s0 + $0x2] ss:$8 sm:$0xf0]   ;;  %v134_v9 = vld [vmem:[%s285_s0 + $0x6] ss:$8 sm:$0xf]  }
   0x5   :  { %v62_v10 = vsel %vm32_vm0, %v133_v8, %v132_v6  ;;  %v135_v11 = vld [vmem:[%s285_s0 + $0x6] ss:$8 sm:$0xf0]   ;;  %s150_s27 = smov 64   ;;  %s23_s9 = smov 3  ;;  %vm94_vm4 = vcmask 523520  }
   0x6   :  { %v139_v12 = vld [vmem:[%s285_s0 + $0x1] ss:$8 sm:$0xf]   ;;  %v141_v14 = vld [vmem:[%s285_s0 + $0x5] ss:$8 sm:$0xf]   ;;  %v72_v15 = vsel %vm32_vm0, %v135_v11, %v134_v9 }
   0x7   :  { %v140_v13 = vld [vmem:[%s285_s0 + $0x1] ss:$8 sm:$0xf0]   ;;  %v137_v16 = vld [vmem:[%s285_s0 + $0x42] ss:$4 sm:%s79_s26]   ;;  %s151_s6 = smov 32  }
   0x8   :  { %44 = vrot.lane.b32.xlu0 %v43_v7, %s149_s15  ;;  %63 = vrot.lane.b32.xlu1 %v62_v10, %s150_s27  ;;  %v142_v17 = vld [vmem:[%s285_s0 + $0x5] ss:$8 sm:$0xf0]   ;;  %v2_v19 = vld [vmem:[%s285_s0] ss:$4 sm:$0xff]   ;;  %v91_v21 = vsel %vm32_vm0, %v140_v13, %v139_v12 }
   0x9   :  { %v123_v18 = vld [vmem:[%s285_s0 + $0x40] ss:$4 sm:%s23_s9]   ;;  %4 = vst.msk [vmem:[%s286_s1] ss:$8 sm:$0x3] %vm3_vm1, %v2_v19   ;;  %v101_v22 = vsel %vm32_vm0, %v142_v17, %v141_v14 }
   0xa   :  { %v118_v20 = vld [vmem:[%s285_s0 + $0x20] ss:$4 sm:$0xff]   ;;  %124 = vst.msk [vmem:[%s286_s1 + $0x10] ss:$8 sm:$0x3] %vm3_vm1, %v123_v18  }
   0xb   :  { %115 = vst.msk [vmem:[%s286_s1 - $0xf] ss:$8 sm:$0xc] %vm3_vm1, %v2_v19   ;;  %116 = vst.msk [vmem:[%s286_s1 - $0x1e] ss:$8 sm:$0x30] %vm3_vm1, %v2_v19  }
   0xc   :  { %117 = vst.msk [vmem:[%s286_s1 - $0x2d] ss:$8 sm:$0xc0] %vm3_vm1, %v2_v19   ;;  %119 = vst.msk [vmem:[%s286_s1 + $0x4] ss:$8 sm:$0x3] %vm3_vm1, %v118_v20   ;;  %73 = vrot.lane.b32.xlu0 %v72_v15, %s150_s27  ;;  %81 = vrot.lane.b32.xlu1 %v137_v16, %s150_s27 }
   0xd   :  { %120 = vst.msk [vmem:[%s286_s1 - $0xb] ss:$8 sm:$0xc] %vm3_vm1, %v118_v20   ;;  %121 = vst.msk [vmem:[%s286_s1 - $0x1a] ss:$8 sm:$0x30] %vm3_vm1, %v118_v20  }
   0xe   :  { %122 = vst.msk [vmem:[%s286_s1 - $0x29] ss:$8 sm:$0xc0] %vm3_vm1, %v118_v20   ;;  %s108_s27 = smov 3 }
   0xf   :  { %v144_v23 = vld [vmem:[%s285_s0 + $0x41] ss:$4 sm:%s108_s27]  }
  0x10   :  { %92 = vrot.lane.b32.xlu0 %v91_v21, %s151_s6  ;;  %102 = vrot.lane.b32.xlu1 %v101_v22, %s151_s6 }
  0x14   :  { %110 = vrot.lane.b32.xlu0 %v144_v23, %s151_s6 }
  0x76   :  { %v35_v24 = vpop.permute.xlu0 %34   ;;  %v53_v25 = vpop.permute.xlu1 %52  }
  0x77   :  { %131 = vst.msk [vmem:[%s286_s1 + $0x10] ss:$8 sm:$0x3] %vm36_vm2, %v53_v25   ;;  %37 = vst.msk [vmem:[%s286_s1] sm:$0xff] %vm36_vm2, %v35_v24  }
  0x7a   :  { %v45_v26 = vpop.permute.xlu0 %44   ;;  %v64_v27 = vpop.permute.xlu1 %63  }
  0x7b   :  { %66 = vst.msk [vmem:[%s286_s1] sm:$0xff] %vm65_vm3, %v64_v27  }
  0x7c   :  { %129 = vst.msk [vmem:[%s286_s1 + $0x8] sm:$0xff] %vm36_vm2, %v45_v26  }
  0x7e   :  { %v74_v28 = vpop.permute.xlu0 %73   ;;  %v82_v29 = vpop.permute.xlu1 %81  }
  0x7f   :  { %136 = vst.msk [vmem:[%s286_s1 + $0x8] sm:$0xff] %vm65_vm3, %v74_v28   ;;  %138 = vst.msk [vmem:[%s286_s1 + $0x10] ss:$8 sm:$0x3] %vm65_vm3, %v82_v29  }
  0x82   :  { %v93_v30 = vpop.permute.xlu0 %92   ;;  %v103_v31 = vpop.permute.xlu1 %102  }
  0x83   :  { %95 = vst.msk [vmem:[%s286_s1] sm:$0xff] %vm94_vm4, %v93_v30   ;;  %143 = vst.msk [vmem:[%s286_s1 + $0x8] sm:$0xff] %vm94_vm4, %v103_v31  }
  0x86   :  { %v111_v32 = vpop.permute.xlu0 %110  }
  0x87   :  { %145 = vst.msk [vmem:[%s286_s1 + $0x10] ss:$8 sm:$0x3] %vm94_vm4, %v111_v32  }

// kernel: cnn_encoder_forward.1
= control target key start
LH: loop header
LB: loop body
LE: loop exit
PB: predicated region body
PF: predicated region fallthrough
CT: control target
= control target key end

     0   :  { %v1906_v0 = vmov 0.0   ;;  %vm95_vm0 = vcmask 719872   ;;  %v1907_v60 = vmov 0   ;;  %vm495_vm1 = vcmask 261120   ;;  %s1910_s26 = smov 64   ;;  %s2710_s1 = inlined_call_operand.vmem [shape: f32[216,128], index: 1, kind: input, shape index: {}]   ;;  %s2711_s0 = inlined_call_operand.vmem [shape: f32[2,32,216], index: 0, kind: input, shape index: {}]   ;;  %s2712_s3 = inlined_call_operand.vmem [shape: bf16[128,256], index: 3, kind: input, shape index: {}]   ;;  %s2713_s2 = inlined_call_operand.vmem [shape: f32[1,128], index: 2, kind: input, shape index: {}]   ;;  %s2714_s4 = inlined_call_operand.vmem [shape: f32[1,256], index: 4, kind: input, shape index: {}]   ;;  %s2715_s5 = inlined_call_operand.vmem [shape: f32[9,256], index: 5, kind: input, shape index: {}]   ;;  %s2716_s7 = inlined_call_operand.vmem [shape: bf16[256,8], index: 7, kind: input, shape index: {}]   ;;  %s2717_s6 = inlined_call_operand.vmem [shape: f32[1,256], index: 6, kind: input, shape index: {}]   ;;  %s2718_s9 = inlined_call_operand.vmem [shape: bf16[8,32], index: 9, kind: input, shape index: {}]   ;;  %s2719_s8 = inlined_call_operand.vmem [shape: f32[1,8], index: 8, kind: input, shape index: {}]   ;;  %s2720_s11 = inlined_call_operand.vmem [shape: bf16[256,512], index: 11, kind: input, shape index: {}]   ;;  %s2721_s10 = inlined_call_operand.vmem [shape: f32[1,32], index: 10, kind: input, shape index: {}]   ;;  %s2722_s12 = inlined_call_operand.vmem [shape: f32[1,512], index: 12, kind: input, shape index: {}]   ;;  %s2723_s13 = inlined_call_operand.vmem [shape: f32[2,8,512], index: 13, kind: output, shape index: {}]  }
   0x1   :  { %120 = vmatprep.subr.mxu0 %v1906_v0  ;;  %v76_v1 = vld [vmem:[%s2710_s1 + $0x78] sm:$0xff]  ;;  %v75_v2 = vld [vmem:[%s2710_s1 + $0x70] sm:$0xff]  ;;  %v74_v3 = vld [vmem:[%s2710_s1 + $0x68] sm:$0xff]  ;;  %409 = vmatprep.mubr.bf16.mxu1 %v1907_v60  ;;  %vm699_vm2 = vcmask 1040384   ;;  %vm803_vm3 = vcmask 1041409   ;;  %vm960_vm4 = vcmask 1043456  }
   0x2   :  { %121 = vmatpush1.msra.mxu0 %v76_v1  ;;  %v73_v4 = vld [vmem:[%s2710_s1 + $0x60] sm:$0xff]  ;;  %v72_v5 = vld [vmem:[%s2710_s1 + $0x58] sm:$0xff]  ;;  %v71_v6 = vld [vmem:[%s2710_s1 + $0x50] sm:$0xff]  ;;  %vm1909_vm5 = vmmov 0   ;;  %vm956_vm6 = vcmask 64512   ;;  %vm1019_vm7 = vcmask 523264  }
   0x3   :  { %122 = vmatprep.subr.mxu0 %v1906_v0  ;;  %v46_v7 = vld [vmem:[%s2711_s0 + $0x8] sm:$0xff]  ;;  %v69_v9 = vld [vmem:[%s2710_s1 + $0x40] sm:$0xff]  ;;  %v68_v10 = vld [vmem:[%s2710_s1 + $0x38] sm:$0xff]  ;;  %vm1021_vm8 = vcmask 785408  }
   0x4   :  { %123 = vmatpush1.msra.mxu0 %v75_v2  ;;  %v70_v8 = vld [vmem:[%s2710_s1 + $0x48] sm:$0xff]  ;;  %1618 = vmatprep.mubr.msk.f32.mxu0 %vm95_vm0, %v46_v7  ;;  %v1770_v11 = vld [vmem:[%s2712_s3 + $0x74] ss:$8 sps:$4 sm:$0xff]   ;;  %v1772_v12 = vld [vmem:[%s2712_s3 + $0x70] ss:$8 sps:$4 sm:$0xff]  }
   0x5   :  { %124 = vmatprep.subr.mxu0 %v1906_v0  ;;  %v67_v13 = vld [vmem:[%s2710_s1 + $0x30] sm:$0xff]  ;;  %v1773_v14 = vld [vmem:[%s2712_s3 + $0x64] ss:$8 sps:$4 sm:$0xff]   ;;  %377 = vmatprep.subr.bf16.mxu1 %v1770_v11  ;;  %v1775_v16 = vld [vmem:[%s2712_s3 + $0x60] ss:$8 sps:$4 sm:$0xff]  }
   0x6   :  { %125 = vmatpush1.msra.mxu0 %v74_v3  ;;  %v66_v15 = vld [vmem:[%s2710_s1 + $0x28] sm:$0xff]  ;;  %378 = vmatpush1.bf16.msra.mxu1 %v1772_v12  ;;  %v65_v17 = vld [vmem:[%s2710_s1 + $0x20] sm:$0xff]  ;;  %v1776_v18 = vld [vmem:[%s2712_s3 + $0x54] ss:$8 sps:$4 sm:$0xff]  }
   0x7   :  { %126 = vmatprep.subr.mxu0 %v1906_v0  ;;  %379 = vmatprep.subr.bf16.mxu1 %v1773_v14  ;;  %v64_v19 = vld [vmem:[%s2710_s1 + $0x18] sm:$0xff]  ;;  %v1779_v21 = vld [vmem:[%s2712_s3 + $0x44] ss:$8 sps:$4 sm:$0xff]   ;;  %v63_v22 = vld [vmem:[%s2710_s1 + $0x10] sm:$0xff] }
   0x8   :  { %127 = vmatpush1.msra.mxu0 %v73_v4  ;;  %v1778_v20 = vld [vmem:[%s2712_s3 + $0x50] ss:$8 sps:$4 sm:$0xff]   ;;  %v62_v23 = vld [vmem:[%s2710_s1 + $0x8] sm:$0xff]  ;;  %v61_v24 = vld [vmem:[%s2710_s1] sm:$0xff] }
   0x9   :  { %128 = vmatprep.subr.mxu0 %v1906_v0  ;;  %v87_v25 = vld [vmem:[%s2710_s1 + $0xd0] sm:$0xff]  ;;  %v86_v26 = vld [vmem:[%s2710_s1 + $0xc8] sm:$0xff]  ;;  %v85_v27 = vld [vmem:[%s2710_s1 + $0xc0] sm:$0xff] }
   0xa   :  { %129 = vmatpush1.msra.mxu0 %v72_v5  ;;  %380 = vmatpush1.bf16.msra.mxu1 %v1775_v16  ;;  %v84_v28 = vld [vmem:[%s2710_s1 + $0xb8] sm:$0xff]  ;;  %v83_v29 = vld [vmem:[%s2710_s1 + $0xb0] sm:$0xff]  ;;  %v82_v30 = vld [vmem:[%s2710_s1 + $0xa8] sm:$0xff] }
   0xb   :  { %130 = vmatprep.subr.mxu0 %v1906_v0  ;;  %381 = vmatprep.subr.bf16.mxu1 %v1776_v18  ;;  %v81_v31 = vld [vmem:[%s2710_s1 + $0xa0] sm:$0xff]  ;;  %v80_v32 = vld [vmem:[%s2710_s1 + $0x98] sm:$0xff]  ;;  %v79_v33 = vld [vmem:[%s2710_s1 + $0x90] sm:$0xff] }
   0xc   :  { %131 = vmatpush1.msra.mxu0 %v71_v6  ;;  %v78_v34 = vld [vmem:[%s2710_s1 + $0x88] sm:$0xff]  ;;  %v77_v35 = vld [vmem:[%s2710_s1 + $0x80] sm:$0xff]  ;;  %v48_v37 = vld [vmem:[%s2711_s0 + $0x18] sm:$0xff] }
   0xd   :  { %132 = vmatprep.subr.mxu0 %v1906_v0  ;;  %v45_v36 = vld [vmem:[%s2711_s0] sm:$0xff]  ;;  %v47_v38 = vld [vmem:[%s2711_s0 + $0x10] sm:$0xff]  ;;  %v50_v39 = vld [vmem:[%s2711_s0 + $0x28] sm:$0xff] }
   0xe   :  { %133 = vmatpush1.msra.mxu0 %v70_v8  ;;  %382 = vmatpush1.bf16.msra.mxu1 %v1778_v20  ;;  %v49_v40 = vld [vmem:[%s2711_s0 + $0x20] sm:$0xff]  ;;  %v52_v41 = vld [vmem:[%s2711_s0 + $0x38] sm:$0xff]  ;;  %v51_v42 = vld [vmem:[%s2711_s0 + $0x30] sm:$0xff] }
   0xf   :  { %134 = vmatprep.subr.mxu0 %v1906_v0  ;;  %383 = vmatprep.subr.bf16.mxu1 %v1779_v21  ;;  %v54_v43 = vld [vmem:[%s2711_s0 + $0x48] sm:$0xff]  ;;  %v53_v44 = vld [vmem:[%s2711_s0 + $0x40] sm:$0xff]  ;;  %v56_v45 = vld [vmem:[%s2711_s0 + $0x58] sm:$0xff] }
  0x10   :  { %135 = vmatpush1.msra.mxu0 %v69_v9  ;;  %v55_v46 = vld [vmem:[%s2711_s0 + $0x50] sm:$0xff]  ;;  %v58_v47 = vld [vmem:[%s2711_s0 + $0x68] sm:$0xff]  ;;  %v57_v48 = vld [vmem:[%s2711_s0 + $0x60] sm:$0xff] }
  0x11   :  { %136 = vmatprep.subr.mxu0 %v1906_v0  ;;  %v60_v49 = vld [vmem:[%s2711_s0 + $0x78] sm:$0xff]  ;;  %v59_v50 = vld [vmem:[%s2711_s0 + $0x70] sm:$0xff]  ;;  %v1781_v51 = vld [vmem:[%s2712_s3 + $0x40] ss:$8 sps:$4 sm:$0xff]  }
  0x12   :  { %137 = vmatpush1.msra.mxu0 %v68_v10  ;;  %384 = vmatpush1.bf16.msra.mxu1 %v1781_v51  ;;  %v1782_v52 = vld [vmem:[%s2712_s3 + $0x34] ss:$8 sps:$4 sm:$0xff]   ;;  %v1784_v53 = vld [vmem:[%s2712_s3 + $0x30] ss:$8 sps:$4 sm:$0xff]   ;;  %v1785_v54 = vld [vmem:[%s2712_s3 + $0x24] ss:$8 sps:$4 sm:$0xff]  }
  0x13   :  { %138 = vmatprep.subr.mxu0 %v1906_v0  ;;  %385 = vmatprep.subr.bf16.mxu1 %v1782_v52  ;;  %v1787_v55 = vld [vmem:[%s2712_s3 + $0x20] ss:$8 sps:$4 sm:$0xff]   ;;  %v1788_v56 = vld [vmem:[%s2712_s3 + $0x14] ss:$8 sps:$4 sm:$0xff]   ;;  %v1790_v57 = vld [vmem:[%s2712_s3 + $0x10] ss:$8 sps:$4 sm:$0xff]  }
  0x14   :  { %139 = vmatpush1.msra.mxu0 %v67_v13  ;;  %v1791_v58 = vld [vmem:[%s2712_s3 + $0x4] ss:$8 sps:$4 sm:$0xff]   ;;  %v1793_v59 = vld [vmem:[%s2712_s3] ss:$8 sps:$4 sm:$0xff]  }
  0x15   :  { %140 = vmatprep.subr.mxu0 %v1906_v0  ;;  %v1617_v61 = vld [vmem:[%s2713_s2] ss:$0 sm:$0xff] }
  0x16   :  { %141 = vmatpush1.msra.mxu0 %v66_v15  ;;  %386 = vmatpush1.bf16.msra.mxu1 %v1784_v53 }
  0x17   :  { %142 = vmatprep.subr.mxu0 %v1906_v0  ;;  %387 = vmatprep.subr.bf16.mxu1 %v1785_v54 }
  0x18   :  { %143 = vmatpush1.msra.mxu0 %v65_v17 }
  0x19   :  { %144 = vmatprep.subr.mxu0 %v1906_v0 }
  0x1a   :  { %145 = vmatpush1.msra.mxu0 %v64_v19  ;;  %388 = vmatpush1.bf16.msra.mxu1 %v1787_v55 }
  0x1b   :  { %146 = vmatprep.subr.mxu0 %v1906_v0  ;;  %389 = vmatprep.subr.bf16.mxu1 %v1788_v56 }
  0x1c   :  { %147 = vmatpush1.msra.mxu0 %v63_v22 }
  0x1d   :  { %148 = vmatprep.subr.mxu0 %v1906_v0 }
  0x1e   :  { %149 = vmatpush1.msra.mxu0 %v62_v23  ;;  %390 = vmatpush1.bf16.msra.mxu1 %v1790_v57 }
  0x1f   :  { %150 = vmatprep.subr.mxu0 %v1906_v0  ;;  %391 = vmatprep.subr.bf16.mxu1 %v1791_v58 }
  0x20   :  { %151 = vmatpush1.msra.mxu0 %v61_v24 }
  0x21   :  { %162 = vmatprep.subr.mxu0 %v1906_v0 }
  0x22   :  { %163 = vmatpush2.msra.mxu0 %v87_v25  ;;  %392 = vmatpush1.bf16.msra.mxu1 %v1793_v59 }
  0x23   :  { %164 = vmatprep.subr.mxu0 %v1906_v0 }
  0x24   :  { %165 = vmatpush2.msra.mxu0 %v86_v26 }
  0x25   :  { %166 = vmatprep.subr.mxu0 %v1906_v0 }
  0x26   :  { %167 = vmatpush2.msra.mxu0 %v85_v27 }
  0x27   :  { %168 = vmatprep.subr.mxu0 %v1906_v0 }
  0x28   :  { %169 = vmatpush2.msra.mxu0 %v84_v28 }
  0x29   :  { %170 = vmatprep.subr.mxu0 %v1906_v0 }
  0x2a   :  { %171 = vmatpush2.msra.mxu0 %v83_v29 }
  0x2b   :  { %172 = vmatprep.subr.mxu0 %v1906_v0 }
  0x2c   :  { %173 = vmatpush2.msra.mxu0 %v82_v30 }
  0x2d   :  { %174 = vmatprep.subr.mxu0 %v1906_v0 }
  0x2e   :  { %175 = vmatpush2.msra.mxu0 %v81_v31 }
  0x2f   :  { %176 = vmatprep.subr.mxu0 %v1906_v0 }
  0x30   :  { %177 = vmatpush2.msra.mxu0 %v80_v32 }
  0x31   :  { %178 = vmatprep.subr.mxu0 %v1906_v0 }
  0x32   :  { %179 = vmatpush2.msra.mxu0 %v79_v33 }
  0x33   :  { %180 = vmatprep.subr.mxu0 %v1906_v0 }
  0x34   :  { %181 = vmatpush2.msra.mxu0 %v78_v34 }
  0x35   :  { %182 = vmatprep.subr.mxu0 %v1906_v0 }
  0x36   :  { %183 = vmatpush2.msra.mxu0 %v77_v35 }
  0x37   :  { %185 = vmatmul.mubr.f32.vlgmr.msra.gmra.mxu0 %v45_v36 }
  0x38   :  { %1619 = vmatprep.mubr.msk.f32.mxu0 %vm95_vm0, %v48_v37 }
  0x3b   :  { %190 = vmatmul.mubr.f32.gmra.mxu0 %v47_v38 }
  0x3c   :  { %1620 = vmatprep.mubr.msk.f32.mxu0 %vm95_vm0, %v50_v39 }
  0x3f   :  { %195 = vmatmul.mubr.f32.gmra.mxu0 %v49_v40 }
  0x40   :  { %1621 = vmatprep.mubr.msk.f32.mxu0 %vm95_vm0, %v52_v41 }
  0x43   :  { %200 = vmatmul.mubr.f32.gmra.mxu0 %v51_v42 }
  0x44   :  { %1622 = vmatprep.mubr.msk.f32.mxu0 %vm95_vm0, %v54_v43 }
  0x47   :  { %205 = vmatmul.mubr.f32.gmra.mxu0 %v53_v44 }
  0x48   :  { %1623 = vmatprep.mubr.msk.f32.mxu0 %vm95_vm0, %v56_v45 }
  0x4b   :  { %210 = vmatmul.mubr.f32.gmra.mxu0 %v55_v46 }
  0x4c   :  { %1624 = vmatprep.mubr.msk.f32.mxu0 %vm95_vm0, %v58_v47 }
  0x4f   :  { %215 = vmatmul.mubr.f32.gmra.mxu0 %v57_v48 }
  0x50   :  { %1625 = vmatprep.mubr.msk.f32.mxu0 %vm95_vm0, %v60_v49 }
  0x53   :  { %220 = vmatmul.mubr.f32.gmra.mxu0 %v59_v50 }
  0xf7   :  { %v186_v62 = vpop.f32.mrf.mxu0 }
  0xf8   :  { %v187_v63 = vadd.f32 %v1617_v61, %v186_v62 }
  0xf9   :  { %v188_v1 = vpop.f32.mrf.mxu0 }
  0xfa   :  { %v225_v2 = vadd.f32 3.0, %v187_v63 }
  0xfb   :  { %v191_v3 = vpop.f32.mrf.mxu0 }
  0xfc   :  { %v233_v4 = vmax.f32 %v225_v2, 0.0  ;;  %v192_v5 = vadd.f32 %v1617_v61, %v191_v3 }
  0xfd   :  { %v193_v6 = vpop.f32.mrf.mxu0 }
  0xfe   :  { %v241_v7 = vmin.f32 %v233_v4, 6.0  ;;  %v226_v8 = vadd.f32 3.0, %v192_v5  ;;  %v287_v6 = vlaneseq }
  0xff   :  { %v196_v9 = vpop.f32.mrf.mxu0 }
 0x100   :  { %v234_v10 = vmax.f32 %v226_v8, 0.0  ;;  %v197_v11 = vadd.f32 %v1617_v61, %v196_v9  ;;  %v249_v13 = vmul.f32 %v241_v7, %v187_v63  ;;  %v2202_v7 = vshrl.u32 %v287_v6, 7  ;;  %v285_v8 = vld [vmem:[%s2714_s4] sm:$0x3]  ;;  %s1908_s4 = smov 32  }
 0x101   :  { %v198_v12 = vpop.f32.mrf.mxu0 }
 0x102   :  { %v242_v14 = vmin.f32 %v234_v10, 6.0  ;;  %v227_v15 = vadd.f32 3.0, %v197_v11  ;;  %v257_v21 = vmul.f32 0.16666667, %v249_v13  ;;  %v2211_v9 = vsub.s32 1, %v2202_v7 }
 0x103   :  { %v201_v16 = vpop.f32.mrf.mxu0  ;;  %v1645_v13 = vld [vmem:[%s2715_s5 + $0x4] ss:$8 sm:$0x3] }
 0x104   :  { %v250_v17 = vmul.f32 %v242_v14, %v192_v5  ;;  %v235_v18 = vmax.f32 %v227_v15, 0.0  ;;  %v202_v19 = vadd.f32 %v1617_v61, %v201_v16  ;;  %v2217_v10 = vrot.slane %v285_v8, %v2211_v9  ;;  %v1646_v15 = vld [vmem:[%s2715_s5 + $0x5] ss:$8 sm:$0x3] }
 0x105   :  { %v203_v20 = vpop.f32.mrf.mxu0 }
 0x106   :  { %v258_v22 = vmul.f32 0.16666667, %v250_v17  ;;  %v243_v23 = vmin.f32 %v235_v18, 6.0  ;;  %v228_v24 = vadd.f32 3.0, %v202_v19 }
 0x107   :  { %v206_v25 = vpop.f32.mrf.mxu0 }
 0x108   :  { %v236_v26 = vmax.f32 %v228_v24, 0.0  ;;  %v207_v27 = vadd.f32 %v1617_v61, %v206_v25  ;;  %v265_v28 = vpack.c.bf16 %v258_v22, %v257_v21  ;;  %v251_v30 = vmul.f32 %v243_v23, %v197_v11 }
 0x109   :  { %v208_v29 = vpop.f32.mrf.mxu0  ;;  %v585_v22 = vrot.slane %v1645_v13, %v2211_v9 }
 0x10a   :  { %v244_v31 = vmin.f32 %v236_v26, 6.0  ;;  %v229_v32 = vadd.f32 3.0, %v207_v27  ;;  %410 = vmatmul.mubr.bf16.vlgmr.msra.gmra.mxu1 %v265_v28  ;;  %v259_v38 = vmul.f32 0.16666667, %v251_v30 }
 0x10b   :  { %v211_v33 = vpop.f32.mrf.mxu0  ;;  %419 = vmatprep.mubr.bf16.mxu1 %v1907_v60 }
 0x10c   :  { %v252_v34 = vmul.f32 %v244_v31, %v202_v19  ;;  %v237_v35 = vmax.f32 %v229_v32, 0.0  ;;  %v212_v36 = vadd.f32 %v1617_v61, %v211_v33 }
 0x10d   :  { %v213_v37 = vpop.f32.mrf.mxu0 }
 0x10e   :  { %v260_v39 = vmul.f32 0.16666667, %v252_v34  ;;  %v245_v40 = vmin.f32 %v237_v35, 6.0  ;;  %v230_v41 = vadd.f32 3.0, %v212_v36 }
 0x10f   :  { %v216_v42 = vpop.f32.mrf.mxu0 }
 0x110   :  { %v238_v43 = vmax.f32 %v230_v41, 0.0  ;;  %v217_v44 = vadd.f32 %v1617_v61, %v216_v42  ;;  %v266_v45 = vpack.c.bf16 %v260_v39, %v259_v38  ;;  %v253_v47 = vmul.f32 %v245_v40, %v207_v27 }
 0x111   :  { %v218_v46 = vpop.f32.mrf.mxu0  ;;  %v600_v27 = vrot.slane %v1646_v15, %v2211_v9 }
 0x112   :  { %v246_v48 = vmin.f32 %v238_v43, 6.0  ;;  %v231_v49 = vadd.f32 3.0, %v217_v44  ;;  %420 = vmatmul.mubr.bf16.gmra.mxu1 %v266_v45  ;;  %v261_v55 = vmul.f32 0.16666667, %v253_v47 }
 0x113   :  { %v221_v50 = vpop.f32.mrf.mxu0  ;;  %429 = vmatprep.mubr.bf16.mxu1 %v1907_v60 }
 0x114   :  { %v254_v51 = vmul.f32 %v246_v48, %v212_v36  ;;  %v239_v52 = vmax.f32 %v231_v49, 0.0  ;;  %v222_v53 = vadd.f32 %v1617_v61, %v221_v50  ;;  %v2205_v61 = vsub.s32 0, %v2202_v7 }
 0x115   :  { %v223_v54 = vpop.f32.mrf.mxu0 }
 0x116   :  { %v262_v56 = vmul.f32 0.16666667, %v254_v51  ;;  %v247_v57 = vmin.f32 %v239_v52, 6.0  ;;  %v232_v58 = vadd.f32 3.0, %v222_v53  ;;  %v581_v19 = vrot.slane %v1645_v13, %v2205_v61 }
 0x117   :  { %v596_v21 = vrot.slane %v1646_v15, %v2205_v61  ;;  %v1797_v15 = vld [vmem:[%s2716_s7 + $0x30] sm:$0xff]  }
 0x118   :  { %v240_v59 = vmax.f32 %v232_v58, 0.0  ;;  %v267_v62 = vpack.c.bf16 %v262_v56, %v261_v55  ;;  %v255_v63 = vmul.f32 %v247_v57, %v217_v44 }
 0x11a   :  { %v248_v1 = vmin.f32 %v240_v59, 6.0  ;;  %430 = vmatmul.mubr.bf16.gmra.mxu1 %v267_v62  ;;  %v263_v3 = vmul.f32 0.16666667, %v255_v63  ;;  %v1794_v63 = vld [vmem:[%s2716_s7 + $0x78] sm:$0xff]  }
 0x11b   :  { %439 = vmatprep.mubr.bf16.mxu1 %v1907_v60  ;;  %v2214_v60 = vrot.slane %v285_v8, %v2205_v61  ;;  %1733 = vmatprep.subr.bf16.mxu1 %v1794_v63 }
 0x11c   :  { %v256_v2 = vmul.f32 %v248_v1, %v222_v53 }
 0x11e   :  { %v264_v4 = vmul.f32 0.16666667, %v256_v2  ;;  %v1795_v2 = vld [vmem:[%s2716_s7 + $0x38] sm:$0xff]  }
 0x11f   :  { %1734 = vmatpush3.bf16.msra.mxu1 %v1795_v2 }
 0x120   :  { %v268_v5 = vpack.c.bf16 %v264_v4, %v263_v3 }
 0x122   :  { %440 = vmatmul.mubr.bf16.gmra.mxu1 %v268_v5 }
 0x1ca   :  { %v411_v11 = vpop.f32.mrf.mxu1 }
 0x1cb   :  { %v412_v12 = vadd.f32 %v411_v11, %v2214_v60 }
 0x1cc   :  { %v413_v14 = vpop.f32.mrf.mxu1 }
 0x1cd   :  { %v414_v16 = vadd.f32 %v413_v14, %v2217_v10  ;;  %v450_v18 = vmax.f32 %v412_v12, 0.0  ;;  %v1796_v12 = vld [vmem:[%s2716_s7 + $0x70] sm:$0xff]  }
 0x1ce   :  { %v415_v17 = vpop.f32.mrf.mxu1  ;;  %1735 = vmatprep.subr.bf16.mxu1 %v1796_v12 }
 0x1cf   :  { %v416_v20 = vadd.f32 %v415_v17, %v2214_v60  ;;  %v451_v24 = vmax.f32 %v414_v16, 0.0  ;;  %v588_v29 = vmul.f32 %v581_v19, %v450_v18  ;;  %1736 = vmatpush3.bf16.msra.mxu1 %v1797_v15 }
 0x1d0   :  { %v417_v23 = vpop.f32.mrf.mxu1 }
 0x1d1   :  { %v452_v25 = vmax.f32 %v416_v20, 0.0  ;;  %v418_v26 = vadd.f32 %v417_v23, %v2217_v10  ;;  %v589_v34 = vmul.f32 %v585_v22, %v451_v24  ;;  %v1801_v20 = vld [vmem:[%s2716_s7 + $0x20] sm:$0xff]   ;;  %v1804_v23 = vld [vmem:[%s2716_s7 + $0x50] sm:$0xff]  }
 0x1d2   :  { %v421_v28 = vpop.f32.mrf.mxu1  ;;  %v1805_v24 = vld [vmem:[%s2716_s7 + $0x10] sm:$0xff]  }
 0x1d3   :  { %v603_v30 = vmul.f32 %v596_v21, %v452_v25  ;;  %v453_v31 = vmax.f32 %v418_v26, 0.0  ;;  %v2234_v32 = vadd.f32 %v421_v28, %v2214_v60  ;;  %487 = vrot.lane.b32.xlu0 %v452_v25, %s1908_s4  ;;  %v1806_v25 = vld [vmem:[%s2716_s7 + $0x48] sm:$0xff]   ;;  %v1809_v28 = vld [vmem:[%s2716_s7] sm:$0xff]  }
 0x1d4   :  { %v423_v33 = vpop.f32.mrf.mxu1  ;;  %v1807_v26 = vld [vmem:[%s2716_s7 + $0x8] sm:$0xff]  }
 0x1d5   :  { %v2237_v35 = vadd.f32 %v603_v30, %v588_v29  ;;  %v604_v36 = vmul.f32 %v600_v27, %v453_v31  ;;  %v2240_v37 = vadd.f32 %v423_v33, %v2217_v10  ;;  %v1644_v29 = vld [vmem:[%s2715_s5 + $0x3] ss:$8 sm:$0x3]  ;;  %v1648_v30 = vld [vmem:[%s2715_s5 + $0x7] ss:$8 sm:$0x3] }
 0x1d6   :  { %v425_v38 = vpop.f32.mrf.mxu1  ;;  %v1649_v33 = vld [vmem:[%s2715_s5 + $0x10] ss:$8 sm:$0x3] }
 0x1d7   :  { %v2242_v39 = vadd.f32 %v604_v36, %v589_v34  ;;  %489 = vrot.lane.b32.xlu0 %v453_v31, %s1908_s4  ;;  %v426_v40 = vadd.f32 %v425_v38, %v2214_v60  ;;  %v2337_v31 = vrot.slane %v1644_v29, %v2205_v61  ;;  %v454_v34 = vmax.f32 %v2234_v32, 0.0 }
 0x1d8   :  { %v427_v41 = vpop.f32.mrf.mxu1  ;;  %v634_v36 = vrot.slane %v1648_v30, %v2205_v61  ;;  %v455_v32 = vmax.f32 %v2240_v37, 0.0  ;;  %v2370_v37 = vrot.slane %v1649_v33, %v2211_v9 }
 0x1d9   :  { %v428_v42 = vadd.f32 %v427_v41, %v2217_v10  ;;  %v2247_v43 = vmax.f32 %v426_v40, 0.0  ;;  %v2346_v41 = vrot.slane %v1649_v33, %v2205_v61 }
 0x1da   :  { %v431_v44 = vpop.f32.mrf.mxu1 }
 0x1db   :  { %v2249_v45 = vmax.f32 %v428_v42, 0.0  ;;  %v432_v46 = vadd.f32 %v431_v44, %v2214_v60  ;;  %508 = vrot.lane.b32.xlu0 %v2247_v43, %s1908_s4  ;;  %v2350_v44 = vrot.slane %v1644_v29, %v2211_v9 }
 0x1dc   :  { %v433_v47 = vpop.f32.mrf.mxu1 }
 0x1dd   :  { %v434_v48 = vadd.f32 %v433_v47, %v2217_v10  ;;  %510 = vrot.lane.b32.xlu1 %v2249_v45, %s1908_s4  ;;  %v458_v50 = vmax.f32 %v432_v46, 0.0  ;;  %v1642_v46 = vld [vmem:[%s2715_s5 + $0x1] ss:$8 sm:$0x3]  ;;  %v641_v47 = vmul.f32 %v634_v36, %v454_v34 }
 0x1de   :  { %v435_v49 = vpop.f32.mrf.mxu1 }
 0x1df   :  { %v436_v51 = vadd.f32 %v435_v49, %v2214_v60  ;;  %v459_v53 = vmax.f32 %v434_v48, 0.0  ;;  %v590_v57 = vmul.f32 %v581_v19, %v458_v50  ;;  %v1798_v19 = vld [vmem:[%s2716_s7 + $0x68] sm:$0xff]   ;;  %v2357_v48 = vrot.slane %v1648_v30, %v2211_v9  ;;  %v708_v30 = vld [vmem:[%s2717_s6] sm:$0x3] }
 0x1e0   :  { %v437_v52 = vpop.f32.mrf.mxu1  ;;  %1737 = vmatprep.subr.bf16.mxu1 %v1798_v19 }
 0x1e1   :  { %v460_v54 = vmax.f32 %v436_v51, 0.0  ;;  %v438_v55 = vadd.f32 %v437_v52, %v2217_v10  ;;  %v591_v3 = vmul.f32 %v585_v22, %v459_v53  ;;  %v1803_v22 = vld [vmem:[%s2716_s7 + $0x18] sm:$0xff]   ;;  %v466_v51 = vld [vmem:[%s2715_s5] ss:$8 sm:$0x3]  ;;  %v642_v63 = vmul.f32 %v2357_v48, %v455_v32 }
 0x1e2   :  { %v441_v56 = vpop.f32.mrf.mxu1  ;;  %v1643_v53 = vld [vmem:[%s2715_s5 + $0x2] ss:$8 sm:$0x3] }
 0x1e3   :  { %v605_v58 = vmul.f32 %v596_v21, %v460_v54  ;;  %v461_v59 = vmax.f32 %v438_v55, 0.0  ;;  %v2260_v62 = vadd.f32 %v441_v56, %v2214_v60  ;;  %491 = vrot.lane.b32.xlu1 %v460_v54, %s1908_s4  ;;  %v1802_v21 = vld [vmem:[%s2716_s7 + $0x58] sm:$0xff]   ;;  %v660_v54 = vmul.f32 %v2346_v41, %v2247_v43 }
 0x1e4   :  { %v443_v1 = vpop.f32.mrf.mxu1  ;;  %v2374_v56 = vrot.slane %v1642_v46, %v2205_v61 }
 0x1e5   :  { %v2269_v4 = vadd.f32 %v605_v58, %v590_v57  ;;  %v606_v5 = vmul.f32 %v600_v27, %v461_v59  ;;  %v2272_v6 = vadd.f32 %v443_v1, %v2217_v10  ;;  %v1808_v27 = vld [vmem:[%s2716_s7 + $0x40] sm:$0xff]   ;;  %v2377_v57 = vrot.slane %v1642_v46, %v2211_v9 }
 0x1e6   :  { %v445_v8 = vpop.f32.mrf.mxu1  ;;  %v1647_v58 = vld [vmem:[%s2715_s5 + $0x6] ss:$8 sm:$0x3]  ;;  %v535_v19 = vmul.f32 %v2374_v56, %v454_v34  ;;  %v462_v29 = vmax.f32 %v2260_v62, 0.0 }
 0x1e7   :  { %v2274_v11 = vadd.f32 %v606_v5, %v591_v3  ;;  %493 = vrot.lane.b32.xlu1 %v461_v59, %s1908_s4  ;;  %v446_v13 = vadd.f32 %v445_v8, %v2214_v60  ;;  %v1799_v60 = vld [vmem:[%s2716_s7 + $0x28] sm:$0xff]   ;;  %v2383_v59 = vrot.slane %v466_v51, %v2205_v61  ;;  %v2388_v3 = vrot.slane %v466_v51, %v2211_v9 }
 0x1e8   :  { %v447_v14 = vpop.f32.mrf.mxu1  ;;  %1738 = vmatpush3.bf16.msra.mxu1 %v1799_v60  ;;  %v2391_v5 = vrot.slane %v1643_v53, %v2205_v61  ;;  %v2394_v8 = vrot.slane %v1643_v53, %v2211_v9  ;;  %v2399_v15 = vrot.slane %v1647_v58, %v2205_v61  ;;  %v643_v62 = vmul.f32 %v634_v36, %v462_v29 }
 0x1e9   :  { %v448_v16 = vadd.f32 %v447_v14, %v2217_v10  ;;  %v2285_v17 = vmax.f32 %v446_v13, 0.0  ;;  %v1800_v10 = vld [vmem:[%s2716_s7 + $0x60] sm:$0xff]   ;;  %v661_v13 = vmul.f32 %v2370_v37, %v2249_v45 }
 0x1ea   :  { %1739 = vmatprep.subr.bf16.mxu1 %v1800_v10  ;;  %v2405_v10 = vrot.slane %v1647_v58, %v2211_v9 }
 0x1eb   :  { %v2287_v18 = vmax.f32 %v448_v16, 0.0  ;;  %512 = vrot.lane.b32.xlu0 %v2285_v17, %s1908_s4 }
 0x1ec   :  { %1740 = vmatpush3.bf16.msra.mxu1 %v1801_v20 }
 0x1ed   :  { %514 = vrot.lane.b32.xlu1 %v2287_v18, %s1908_s4  ;;  %1741 = vmatprep.subr.bf16.mxu1 %v1802_v21  ;;  %v536_v21 = vmul.f32 %v2377_v57, %v455_v32 }
 0x1f0   :  { %1742 = vmatpush3.bf16.msra.mxu1 %v1803_v22 }
 0x1f1   :  { %1743 = vmatprep.subr.bf16.mxu1 %v1804_v23 }
 0x1f4   :  { %1744 = vmatpush3.bf16.msra.mxu1 %v1805_v24  ;;  %v569_v24 = vmul.f32 %v2391_v5, %v2247_v43 }
 0x1f5   :  { %1745 = vmatprep.subr.bf16.mxu1 %v1806_v25 }
 0x1f8   :  { %1746 = vmatpush3.bf16.msra.mxu1 %v1807_v26  ;;  %v570_v26 = vmul.f32 %v2394_v8, %v2249_v45  ;;  %v713_v45 = vrot.slane %v708_v30, %v2205_v61 }
 0x1f9   :  { %1747 = vmatprep.subr.bf16.mxu1 %v1808_v27 }
 0x1fc   :  { %1748 = vmatpush3.bf16.msra.mxu1 %v1809_v28 }
 0x1fd   :  { %1757 = vmatprep.subr.bf16.mxu1 %v1906_v0 }
 0x245   :  { %v488_v38 = vpop.permute.xlu0 %487 }
 0x246   :  { %v502_v40 = vsel %vm495_vm1, 0.0, %v488_v38 }
 0x247   :  { %v622_v42 = vmul.f32 %v2337_v31, %v502_v40 }
 0x249   :  { %v626_v49 = vadd.f32 %v622_v42, %v2237_v35  ;;  %v490_v50 = vpop.permute.xlu0 %489 }
 0x24a   :  { %v496_v52 = vsel %vm495_vm1, %v488_v38, %v490_v50  ;;  %v717_v50 = vrot.slane %v708_v30, %v2211_v9 }
 0x24b   :  { %v645_v55 = vadd.f32 %v641_v47, %v626_v49  ;;  %v623_v35 = vmul.f32 %v2350_v44, %v496_v52  ;;  %v463_v52 = vmax.f32 %v2272_v6, 0.0 }
 0x24d   :  { %v627_v1 = vadd.f32 %v623_v35, %v2242_v39  ;;  %v664_v2 = vadd.f32 %v660_v54, %v645_v55  ;;  %v509_v12 = vpop.permute.xlu0 %508 }
 0x24e   :  { %v522_v39 = vsel %vm495_vm1, 0.0, %v509_v12 }
 0x24f   :  { %v646_v14 = vadd.f32 %v642_v63, %v627_v1  ;;  %v511_v16 = vpop.permute.xlu1 %510  ;;  %v550_v60 = vmul.f32 %v2383_v59, %v522_v39  ;;  %v679_v27 = vmul.f32 %v2399_v15, %v522_v39 }
 0x250   :  { %v516_v20 = vsel %vm495_vm1, %v509_v12, %v511_v16 }
 0x251   :  { %v551_v22 = vmul.f32 %v2388_v3, %v516_v20  ;;  %v665_v23 = vadd.f32 %v661_v13, %v646_v14  ;;  %v554_v25 = vadd.f32 %v550_v60, %v535_v19  ;;  %v680_v34 = vmul.f32 %v2405_v10, %v516_v20 }
 0x252   :  { %v683_v46 = vadd.f32 %v679_v27, %v664_v2  ;;  %v644_v13 = vmul.f32 %v2357_v48, %v463_v52  ;;  %v663_v19 = vmul.f32 %v2370_v37, %v2287_v18  ;;  %v571_v37 = vmul.f32 %v2391_v5, %v2285_v17 }
 0x253   :  { %v555_v28 = vadd.f32 %v551_v22, %v536_v21  ;;  %v573_v33 = vadd.f32 %v569_v24, %v554_v25  ;;  %v684_v51 = vadd.f32 %v680_v34, %v665_v23  ;;  %v538_v22 = vmul.f32 %v2377_v57, %v463_v52 }
 0x255   :  { %v574_v38 = vadd.f32 %v570_v26, %v555_v28  ;;  %v492_v40 = vpop.permute.xlu1 %491  ;;  %v691_v43 = vrot.slane %v573_v33, 7 }
 0x256   :  { %v503_v42 = vsel %vm495_vm1, 0.0, %v492_v40 }
 0x257   :  { %v692_v47 = vrot.slane %v574_v38, 7  ;;  %v624_v32 = vmul.f32 %v2337_v31, %v503_v42  ;;  %v700_v49 = vsel %vm699_vm2, 0.0, %v691_v43  ;;  %v662_v31 = vmul.f32 %v2346_v41, %v2285_v17 }
 0x258   :  { %v704_v53 = vadd.f32 %v700_v49, %v683_v46 }
 0x259   :  { %v701_v54 = vsel %vm699_vm2, 0.0, %v692_v47  ;;  %v628_v55 = vadd.f32 %v624_v32, %v2269_v4  ;;  %v494_v35 = vpop.permute.xlu1 %493 }
 0x25a   :  { %v705_v58 = vadd.f32 %v701_v54, %v684_v51  ;;  %v497_v63 = vsel %vm495_vm1, %v492_v40, %v494_v35  ;;  %v720_v36 = vadd.f32 %v713_v45, %v704_v53 }
 0x25b   :  { %v647_v1 = vadd.f32 %v643_v62, %v628_v55  ;;  %v625_v2 = vmul.f32 %v2350_v44, %v497_v63  ;;  %v537_v44 = vmul.f32 %v2374_v56, %v462_v29  ;;  %v572_v56 = vmul.f32 %v2394_v8, %v2287_v18 }
 0x25c   :  { %v721_v12 = vadd.f32 %v717_v50, %v705_v58  ;;  %v2433_v6 = vmax.f32 %v720_v36, 0.0 }
 0x25d   :  { %v629_v14 = vadd.f32 %v625_v2, %v2274_v11  ;;  %v666_v39 = vadd.f32 %v662_v31, %v647_v1  ;;  %v513_v16 = vpop.permute.xlu0 %512 }
 0x25e   :  { %v2436_v4 = vmax.f32 %v721_v12, 0.0  ;;  %v523_v41 = vsel %vm495_vm1, 0.0, %v513_v16  ;;  %v728_v11 = vrot.slane %v2433_v6, 4 }
 0x25f   :  { %v648_v60 = vadd.f32 %v644_v13, %v629_v14  ;;  %v515_v20 = vpop.permute.xlu1 %514  ;;  %v552_v21 = vmul.f32 %v2383_v59, %v523_v41  ;;  %v681_v59 = vmul.f32 %v2399_v15, %v523_v41 }
 0x260   :  { %v517_v48 = vsel %vm495_vm1, %v513_v16, %v515_v20  ;;  %v734_v25 = vrot.slane %v2436_v4, 4  ;;  %v729_v29 = vadd.f32 %v728_v11, %v2433_v6  ;;  %v948_v11 = vld [vmem:[%s2718_s9] sm:$0xf] }
 0x261   :  { %v667_v23 = vadd.f32 %v663_v19, %v648_v60  ;;  %v553_v24 = vmul.f32 %v2388_v3, %v517_v48  ;;  %v556_v26 = vadd.f32 %v552_v21, %v537_v44  ;;  %v682_v57 = vmul.f32 %v2405_v10, %v517_v48 }
 0x262   :  { %v735_v3 = vadd.f32 %v734_v25, %v2436_v4  ;;  %v685_v34 = vadd.f32 %v681_v59, %v666_v39  ;;  %v730_v40 = vrot.slane %v729_v29, 2 }
 0x263   :  { %v557_v27 = vadd.f32 %v553_v24, %v538_v22  ;;  %v575_v28 = vadd.f32 %v571_v37, %v556_v26  ;;  %v686_v38 = vadd.f32 %v682_v57, %v667_v23  ;;  %v962_v23 = vsel %vm960_vm4, %v948_v11, 0  ;;  %v1650_v37 = vld [vmem:[%s2719_s8] ss:$0 sm:$0xff] }
 0x264   :  { %v736_v15 = vrot.slane %v735_v3, 2  ;;  %v731_v10 = vadd.f32 %v730_v40, %v729_v29  ;;  %v1810_v29 = vld [vmem:[%s2720_s11 + $0xe0] ss:$16 sps:$4 sm:$0xff]  }
 0x265   :  { %v576_v30 = vadd.f32 %v572_v56, %v557_v27  ;;  %v693_v33 = vrot.slane %v575_v28, 7  ;;  %v1822_v40 = vld [vmem:[%s2720_s11 + $0xa0] ss:$16 sps:$4 sm:$0xff]  }
 0x266   :  { %v737_v62 = vadd.f32 %v736_v15, %v735_v3  ;;  %v732_v53 = vrot.slane %v731_v10, 1  ;;  %v1816_v3 = vld [vmem:[%s2720_s11 + $0xc0] ss:$16 sps:$4 sm:$0xff]   ;;  %v1833_v15 = vld [vmem:[%s2720_s11 + $0x8c] ss:$16 sps:$4 sm:$0xff]  }
 0x267   :  { %v694_v17 = vrot.slane %v576_v30, 7  ;;  %v702_v5 = vsel %vm699_vm2, 0.0, %v693_v33  ;;  %v1813_v30 = vld [vmem:[%s2720_s11 + $0xe8] ss:$16 sps:$4 sm:$0xff]   ;;  %v1815_v33 = vld [vmem:[%s2720_s11 + $0xec] ss:$16 sps:$4 sm:$0xff]  }
 0x268   :  { %v706_v43 = vadd.f32 %v702_v5, %v685_v34  ;;  %v738_v54 = vrot.slane %v737_v62, 1  ;;  %v1818_v34 = vld [vmem:[%s2720_s11 + $0xc4] ss:$16 sps:$4 sm:$0xff]   ;;  %v1821_v5 = vld [vmem:[%s2720_s11 + $0xcc] ss:$16 sps:$4 sm:$0xff]  }
 0x269   :  { %v703_v18 = vsel %vm699_vm2, 0.0, %v694_v17  ;;  %v1819_v17 = vld [vmem:[%s2720_s11 + $0xc8] ss:$16 sps:$4 sm:$0xff]   ;;  %v1667_v11 = vld [vmem:[%s2721_s10] ss:$0 sm:$0xff] }
 0x26a   :  { %v707_v8 = vadd.f32 %v703_v18, %v686_v38  ;;  %v722_v42 = vadd.f32 %v713_v45, %v706_v43  ;;  %v739_v63 = vadd.f32 %v738_v54, %v737_v62  ;;  %v1824_v38 = vld [vmem:[%s2720_s11 + $0xa4] ss:$16 sps:$4 sm:$0xff]   ;;  %v1827_v43 = vld [vmem:[%s2720_s11 + $0xac] ss:$16 sps:$4 sm:$0xff]   ;;  %v1825_v18 = vld [vmem:[%s2720_s11 + $0xa8] ss:$16 sps:$4 sm:$0xff]  }
 0x26b   :  { %v1839_v62 = vld [vmem:[%s2720_s11 + $0x6c] ss:$16 sps:$4 sm:$0xff]   ;;  %v1840_v54 = vld [vmem:[%s2720_s11 + $0x40] ss:$16 sps:$4 sm:$0xff]  }
 0x26c   :  { %v723_v46 = vadd.f32 %v717_v50, %v707_v8  ;;  %v2458_v47 = vmax.f32 %v722_v42, 0.0  ;;  %v733_v50 = vadd.f32 %v732_v53, %v731_v10  ;;  %v753_v14 = vpack.c.bf16 %v739_v63, %v739_v63  ;;  %v1830_v8 = vld [vmem:[%s2720_s11 + $0x84] ss:$16 sps:$4 sm:$0xff]   ;;  %v1828_v42 = vld [vmem:[%s2720_s11 + $0x80] ss:$16 sps:$4 sm:$0xff]  }
 0x26d   :  { %v1836_v10 = vld [vmem:[%s2720_s11 + $0x64] ss:$16 sps:$4 sm:$0xff]   ;;  %v1845_v53 = vld [vmem:[%s2720_s11 + $0x4c] ss:$16 sps:$4 sm:$0xff]  }
 0x26e   :  { %v2460_v32 = vmax.f32 %v723_v46, 0.0  ;;  %v740_v49 = vrot.slane %v2458_v47, 4  ;;  %v752_v12 = vpack.c.bf16 %v733_v50, %v733_v50  ;;  %v800_v41 = vunpack.c.l.b16 %v753_v14  ;;  %v1831_v46 = vld [vmem:[%s2720_s11 + $0x88] ss:$16 sps:$4 sm:$0xff]   ;;  %v1854_v63 = vld [vmem:[%s2720_s11 + $0x4] ss:$16 sps:$4 sm:$0xff]  }
 0x26f   :  { %v1849_v50 = vld [vmem:[%s2720_s11 + $0x28] ss:$16 sps:$4 sm:$0xff]  }
 0x270   :  { %v746_v51 = vrot.slane %v2460_v32, 4  ;;  %v741_v52 = vadd.f32 %v740_v49, %v2458_v47  ;;  %v799_v19 = vunpack.c.l.b16 %v752_v12  ;;  %v1834_v49 = vld [vmem:[%s2720_s11 + $0x60] ss:$16 sps:$4 sm:$0xff]   ;;  %v1863_v12 = vld [vmem:[%s2720_s11 + $0x1ec] ss:$16 sps:$4 sm:$0xff]  }
 0x271   :  { %v1861_v14 = vld [vmem:[%s2720_s11 + $0x1e8] ss:$16 sps:$4 sm:$0xff]  }
 0x272   :  { %v747_v55 = vadd.f32 %v746_v51, %v2460_v32  ;;  %v742_v35 = vrot.slane %v741_v52, 2  ;;  %v1837_v51 = vld [vmem:[%s2720_s11 + $0x68] ss:$16 sps:$4 sm:$0xff]  }
 0x274   :  { %v748_v58 = vrot.slane %v747_v55, 2  ;;  %v743_v45 = vadd.f32 %v742_v35, %v741_v52  ;;  %v1842_v52 = vld [vmem:[%s2720_s11 + $0x44] ss:$16 sps:$4 sm:$0xff]  }
 0x275   :  { %v1848_v35 = vld [vmem:[%s2720_s11 + $0x24] ss:$16 sps:$4 sm:$0xff]  }
 0x276   :  { %v749_v31 = vadd.f32 %v748_v58, %v747_v55  ;;  %v744_v36 = vrot.slane %v743_v45, 1  ;;  %v1843_v55 = vld [vmem:[%s2720_s11 + $0x48] ss:$16 sps:$4 sm:$0xff]   ;;  %v1851_v58 = vld [vmem:[%s2720_s11 + $0x2c] ss:$16 sps:$4 sm:$0xff]  }
 0x278   :  { %v750_v1 = vrot.slane %v749_v31, 1  ;;  %v745_v2 = vadd.f32 %v744_v36, %v743_v45  ;;  %v1846_v45 = vld [vmem:[%s2720_s11 + $0x20] ss:$16 sps:$4 sm:$0xff]  }
 0x279   :  { %v1852_v36 = vld [vmem:[%s2720_s11] ss:$16 sps:$4 sm:$0xff]  }
 0x27a   :  { %v751_v13 = vadd.f32 %v750_v1, %v749_v31  ;;  %v754_v39 = vpack.c.bf16 %v745_v2, %v745_v2  ;;  %v1857_v31 = vld [vmem:[%s2720_s11 + $0xc] ss:$16 sps:$4 sm:$0xff]   ;;  %v1855_v1 = vld [vmem:[%s2720_s11 + $0x8] ss:$16 sps:$4 sm:$0xff]   ;;  %v1860_v2 = vld [vmem:[%s2720_s11 + $0x1e4] ss:$16 sps:$4 sm:$0xff]  }
 0x27c   :  { %v755_v16 = vpack.c.bf16 %v751_v13, %v751_v13  ;;  %v801_v60 = vunpack.c.l.b16 %v754_v39  ;;  %v1858_v13 = vld [vmem:[%s2720_s11 + $0x1e0] ss:$16 sps:$4 sm:$0xff]   ;;  %v1866_v39 = vld [vmem:[%s2720_s11 + $0x1c4] ss:$16 sps:$4 sm:$0xff]  }
 0x27e   :  { %v802_v20 = vunpack.c.l.b16 %v755_v16  ;;  %v804_v44 = vsel %vm803_vm3, %v801_v60, %v799_v19  ;;  %v1869_v16 = vld [vmem:[%s2720_s11 + $0x1cc] ss:$16 sps:$4 sm:$0xff]   ;;  %v1864_v19 = vld [vmem:[%s2720_s11 + $0x1c0] ss:$16 sps:$4 sm:$0xff]   ;;  %v1867_v60 = vld [vmem:[%s2720_s11 + $0x1c8] ss:$16 sps:$4 sm:$0xff]  }
 0x27f   :  { %v806_v22 = vpack.c.b16 %v804_v44, %v804_v44  ;;  %v1870_v44 = vld [vmem:[%s2720_s11 + $0x1a0] ss:$16 sps:$4 sm:$0xff]  }
 0x280   :  { %v805_v21 = vsel %vm803_vm3, %v802_v20, %v800_v41  ;;  %v1872_v41 = vld [vmem:[%s2720_s11 + $0x1a4] ss:$16 sps:$4 sm:$0xff]   ;;  %v1875_v20 = vld [vmem:[%s2720_s11 + $0x1ac] ss:$16 sps:$4 sm:$0xff]  }
 0x281   :  { %v807_v48 = vpack.c.b16 %v805_v21, %v805_v21  ;;  %v1873_v21 = vld [vmem:[%s2720_s11 + $0x1a8] ss:$16 sps:$4 sm:$0xff]  }
 0x283   :  { %938 = vmatprep.mubr.bf16.mxu1 %v807_v48  ;;  %v1878_v48 = vld [vmem:[%s2720_s11 + $0x184] ss:$16 sps:$4 sm:$0xff]  }
 0x284   :  { %939 = vmatmul.mubr.bf16.vlgmr.msra.gmra.mxu1 %v806_v22  ;;  %v1881_v22 = vld [vmem:[%s2720_s11 + $0x18c] ss:$16 sps:$4 sm:$0xff]  }
 0x285   :  { %1758 = vmatpush3.bf16.msra.mxu1 %v962_v23  ;;  %1759 = vmatprep.mubr.msk.bf16.mxu1 %vm1909_vm5, %v1906_v0  ;;  %v1812_v0 = vld [vmem:[%s2720_s11 + $0xe4] ss:$16 sps:$4 sm:$0xff]   ;;  %v1876_v23 = vld [vmem:[%s2720_s11 + $0x180] ss:$16 sps:$4 sm:$0xff]  }
 0x286   :  { %1479 = vmatprep.subr.bf16.mxu0 %v1812_v0  ;;  %1522 = vmatprep.subr.bf16.mxu1 %v1815_v33  ;;  %v1893_v33 = vld [vmem:[%s2720_s11 + $0x14c] ss:$16 sps:$4 sm:$0xff]  }
 0x287   :  { %1480 = vmatpush1.bf16.msra.mxu0 %v1810_v29 }
 0x288   :  { %1481 = vmatprep.subr.bf16.mxu0 %v1818_v34  ;;  %v1888_v34 = vld [vmem:[%s2720_s11 + $0x140] ss:$16 sps:$4 sm:$0xff]  }
 0x28b   :  { %1482 = vmatpush1.bf16.msra.mxu0 %v1816_v3 }
 0x28c   :  { %1483 = vmatprep.subr.bf16.mxu0 %v1824_v38 }
 0x28f   :  { %1484 = vmatpush1.bf16.msra.mxu0 %v1822_v40  ;;  %v1896_v40 = vld [vmem:[%s2720_s11 + $0x124] ss:$16 sps:$4 sm:$0xff]  }
 0x290   :  { %1485 = vmatprep.subr.bf16.mxu0 %v1830_v8  ;;  %v1897_v8 = vld [vmem:[%s2720_s11 + $0x128] ss:$16 sps:$4 sm:$0xff]  }
 0x293   :  { %1486 = vmatpush1.bf16.msra.mxu0 %v1828_v42  ;;  %v1902_v42 = vld [vmem:[%s2720_s11 + $0x104] ss:$16 sps:$4 sm:$0xff]  }
 0x294   :  { %1487 = vmatprep.subr.bf16.mxu0 %v1836_v10  ;;  %v1905_v10 = vld [vmem:[%s2720_s11 + $0x10c] ss:$16 sps:$4 sm:$0xff]  }
 0x297   :  { %1488 = vmatpush1.bf16.msra.mxu0 %v1834_v49 }
 0x298   :  { %1489 = vmatprep.subr.bf16.mxu0 %v1842_v52 }
 0x29b   :  { %1490 = vmatpush1.bf16.msra.mxu0 %v1840_v54 }
 0x29c   :  { %1491 = vmatprep.subr.bf16.mxu0 %v1848_v35 }
 0x29f   :  { %1492 = vmatpush1.bf16.msra.mxu0 %v1846_v45 }
 0x2a0   :  { %1493 = vmatprep.subr.bf16.mxu0 %v1854_v63 }
 0x2a3   :  { %1494 = vmatpush1.bf16.msra.mxu0 %v1852_v36 }
 0x2a4   :  { %1495 = vmatprep.subr.bf16.mxu0 %v1860_v2 }
 0x2a7   :  { %1496 = vmatpush2.bf16.msra.mxu0 %v1858_v13 }
 0x2a8   :  { %1497 = vmatprep.subr.bf16.mxu0 %v1866_v39 }
 0x2ab   :  { %1498 = vmatpush2.bf16.msra.mxu0 %v1864_v19 }
 0x2ac   :  { %1499 = vmatprep.subr.bf16.mxu0 %v1872_v41 }
 0x2af   :  { %1500 = vmatpush2.bf16.msra.mxu0 %v1870_v44  ;;  %v1149_v44 = vsub.s32 2, %v2202_v7 }
 0x2b0   :  { %1501 = vmatprep.subr.bf16.mxu0 %v1878_v48 }
 0x2b3   :  { %1502 = vmatpush2.bf16.msra.mxu0 %v1876_v23 }
 0x344   :  { %v1749_v24 = vpop.f32.mrf.mxu1 }
 0x346   :  { %v1750_v25 = vpop.f32.mrf.mxu1 }
 0x347   :  { %v1751_v26 = vadd.f32 %v1750_v25, %v1749_v24  ;;  %v1879_v24 = vld [vmem:[%s2720_s11 + $0x188] ss:$16 sps:$4 sm:$0xff]  }
 0x348   :  { %v1752_v56 = vpop.f32.mrf.mxu1 }
 0x349   :  { %v941_v59 = vadd.f32 %v1751_v26, %v1650_v37  ;;  %v1884_v26 = vld [vmem:[%s2720_s11 + $0x164] ss:$16 sps:$4 sm:$0xff]   ;;  %v1887_v56 = vld [vmem:[%s2720_s11 + $0x16c] ss:$16 sps:$4 sm:$0xff]  }
 0x34a   :  { %v1753_v27 = vpop.f32.mrf.mxu1  ;;  %1503 = vmatprep.subr.bf16.mxu0 %v1884_v26 }
 0x34b   :  { %v946_v28 = vmax.f32 %v941_v59, 0.0  ;;  %v1882_v27 = vld [vmem:[%s2720_s11 + $0x160] ss:$16 sps:$4 sm:$0xff]  }
 0x34c   :  { %1504 = vmatpush2.bf16.msra.mxu0 %v1882_v27 }
 0x34d   :  { %v947_v57 = vpack.c.bf16 %v946_v28, %v946_v28  ;;  %v1885_v28 = vld [vmem:[%s2720_s11 + $0x168] ss:$16 sps:$4 sm:$0xff]  }
 0x34f   :  { %1760 = vmatmul.mubr.msk.bf16.vlgmr.msra.gmra.mxu1 %vm956_vm6, %v947_v57 }
 0x350   :  { %1523 = vmatpush1.bf16.msra.mxu1 %v1813_v30  ;;  %v1890_v30 = vld [vmem:[%s2720_s11 + $0x144] ss:$16 sps:$4 sm:$0xff]  }
 0x351   :  { %1524 = vmatprep.subr.bf16.mxu1 %v1821_v5  ;;  %1505 = vmatprep.subr.bf16.mxu0 %v1890_v30 }
 0x352   :  { %1506 = vmatpush2.bf16.msra.mxu0 %v1888_v34 }
 0x353   :  { %1507 = vmatprep.subr.bf16.mxu0 %v1896_v40 }
 0x354   :  { %1525 = vmatpush1.bf16.msra.mxu1 %v1819_v17  ;;  %v1891_v17 = vld [vmem:[%s2720_s11 + $0x148] ss:$16 sps:$4 sm:$0xff]  }
 0x355   :  { %1526 = vmatprep.subr.bf16.mxu1 %v1827_v43  ;;  %v1899_v43 = vld [vmem:[%s2720_s11 + $0x12c] ss:$16 sps:$4 sm:$0xff]  }
 0x358   :  { %1527 = vmatpush1.bf16.msra.mxu1 %v1825_v18  ;;  %v1894_v18 = vld [vmem:[%s2720_s11 + $0x120] ss:$16 sps:$4 sm:$0xff]  }
 0x359   :  { %1528 = vmatprep.subr.bf16.mxu1 %v1833_v15  ;;  %1508 = vmatpush2.bf16.msra.mxu0 %v1894_v18  ;;  %v1900_v15 = vld [vmem:[%s2720_s11 + $0x100] ss:$16 sps:$4 sm:$0xff]  }
 0x35a   :  { %1509 = vmatprep.subr.bf16.mxu0 %v1902_v42 }
 0x35c   :  { %1529 = vmatpush1.bf16.msra.mxu1 %v1831_v46  ;;  %v1903_v46 = vld [vmem:[%s2720_s11 + $0x108] ss:$16 sps:$4 sm:$0xff]  }
 0x35d   :  { %1530 = vmatprep.subr.bf16.mxu1 %v1839_v62  ;;  %1510 = vmatpush2.bf16.msra.mxu0 %v1900_v15  ;;  %v1912_v62 = vmov 1966171168  }
 0x35e   :  { %v1026_v49 = vunpack.c.l.s4 %v1912_v62 }
 0x360   :  { %1531 = vmatpush1.bf16.msra.mxu1 %v1837_v51  ;;  %v1027_v52 = vunpack.c.0.s8 %v1026_v49 }
 0x361   :  { %1532 = vmatprep.subr.bf16.mxu1 %v1845_v53 }
 0x362   :  { %v1030_v35 = vsub.s32 %v1027_v52, %v2202_v7 }
 0x364   :  { %1533 = vmatpush1.bf16.msra.mxu1 %v1843_v55 }
 0x365   :  { %1534 = vmatprep.subr.bf16.mxu1 %v1851_v58 }
 0x368   :  { %1535 = vmatpush1.bf16.msra.mxu1 %v1849_v50 }
 0x369   :  { %1536 = vmatprep.subr.bf16.mxu1 %v1857_v31 }
 0x36c   :  { %1537 = vmatpush1.bf16.msra.mxu1 %v1855_v1 }
 0x36d   :  { %1538 = vmatprep.subr.bf16.mxu1 %v1863_v12 }
 0x370   :  { %1539 = vmatpush2.bf16.msra.mxu1 %v1861_v14 }
 0x371   :  { %1540 = vmatprep.subr.bf16.mxu1 %v1869_v16 }
 0x374   :  { %1541 = vmatpush2.bf16.msra.mxu1 %v1867_v60 }
 0x375   :  { %1542 = vmatprep.subr.bf16.mxu1 %v1875_v20 }
 0x378   :  { %1543 = vmatpush2.bf16.msra.mxu1 %v1873_v21  ;;  %v1137_v21 = vld [vmem:[%s2722_s12] sm:$0xf] }
 0x379   :  { %1544 = vmatprep.subr.bf16.mxu1 %v1881_v22  ;;  %v1150_v48 = vrot.slane %v1137_v21, %v1149_v44 }
 0x37c   :  { %1545 = vmatpush2.bf16.msra.mxu1 %v1879_v24 }
 0x37d   :  { %1546 = vmatprep.subr.bf16.mxu1 %v1887_v56 }
 0x380   :  { %1547 = vmatpush2.bf16.msra.mxu1 %v1885_v28 }
 0x381   :  { %1548 = vmatprep.subr.bf16.mxu1 %v1893_v33 }
 0x384   :  { %1549 = vmatpush2.bf16.msra.mxu1 %v1891_v17 }
 0x385   :  { %1550 = vmatprep.subr.bf16.mxu1 %v1899_v43 }
 0x388   :  { %1551 = vmatpush2.bf16.msra.mxu1 %v1897_v8 }
 0x389   :  { %1552 = vmatprep.subr.bf16.mxu1 %v1905_v10 }
 0x38c   :  { %1553 = vmatpush2.bf16.msra.mxu1 %v1903_v46 }
 0x40f   :  { %v998_v37 = vpop.f32.mrf.mxu1 }
 0x410   :  { %v999_v25 = vadd.f32 %v1667_v11, %v998_v37 }
 0x411   :  { %v1761_v59 = vpop.f32.mrf.mxu1 }
 0x412   :  { %v1004_v57 = vadd.f32 3.0, %v999_v25 }
 0x413   :  { %v1001_v29 = vpop.f32.mrf.mxu1 }
 0x414   :  { %v1005_v0 = vmax.f32 %v1004_v57, 0.0 }
 0x415   :  { %v1762_v3 = vpop.f32.mrf.mxu1 }
 0x416   :  { %v1006_v5 = vmin.f32 %v1005_v0, 6.0 }
 0x418   :  { %v1007_v38 = vmul.f32 0.16666667, %v1006_v5 }
 0x41a   :  { %1012 = vrot.lane.b32.xlu1 %v1007_v38, %s1910_s26  ;;  %1009 = vrot.lane.b32.xlu0 %v1007_v38, %s1908_s4  ;;  %s1911_s4 = smov 96  }
 0x41e   :  { %1015 = vrot.lane.b32.xlu0 %v1007_v38, %s1911_s4 }
 0x48c   :  { %v1010_v51 = vpop.permute.xlu0 %1009  ;;  %v1013_v53 = vpop.permute.xlu1 %1012 }
 0x48d   :  { %v1018_v54 = vsel %vm495_vm1, %v1007_v38, %v1010_v51 }
 0x48e   :  { %v1020_v55 = vsel %vm1019_vm7, %v1018_v54, %v1013_v53 }
 0x490   :  { %v1016_v58 = vpop.permute.xlu0 %1015 }
 0x491   :  { %v1022_v45 = vsel %vm1021_vm8, %v1020_v55, %v1016_v58 }
 0x492   :  { %v1024_v50 = vcombine.low %v1022_v45, %v1022_v45 }
 0x494   :  { %v1031_v63 = vrot.slane %v1024_v50, %v1030_v35 }
 0x496   :  { %v1032_v31 = vcombine.high %v1031_v63, %v1031_v63  ;;  %v1039_v36 = vrot.slane %v1031_v63, %v1030_v35 }
 0x498   :  { %v1046_v1 = vrot.slane %v1032_v31, %v1030_v35  ;;  %v1050_v2 = vrot.slane %v1039_v36, %v2205_v61  ;;  %v1054_v12 = vrot.slane %v1039_v36, %v2211_v9 }
 0x49a   :  { %v1058_v13 = vrot.slane %v1046_v1, %v2205_v61  ;;  %v1062_v14 = vrot.slane %v1046_v1, %v2211_v9  ;;  %v1067_v39 = vmul.f32 %v1050_v2, %v2433_v6  ;;  %v1068_v19 = vmul.f32 %v1054_v12, %v2436_v4 }
 0x49b   :  { %v1153_v6 = vsub.s32 3, %v2202_v7  ;;  %v1146_v4 = vrot.slane %v1137_v21, %v2211_v9 }
 0x49c   :  { %v1069_v16 = vmul.f32 %v1058_v13, %v2458_v47  ;;  %v1070_v60 = vmul.f32 %v1062_v14, %v2460_v32  ;;  %v1142_v47 = vrot.slane %v1137_v21, %v2205_v61 }
 0x49d   :  { %v1154_v32 = vrot.slane %v1137_v21, %v1153_v6 }
 0x49e   :  { %v1072_v41 = vpack.c.bf16 %v1070_v60, %v1068_v19  ;;  %v1071_v20 = vpack.c.bf16 %v1069_v16, %v1067_v39 }
 0x4a0   :  { %1511 = vmatprep.mubr.bf16.mxu0 %v1072_v41  ;;  %1554 = vmatprep.mubr.bf16.mxu1 %v1072_v41 }
 0x4a1   :  { %1512 = vmatmul.mubr.bf16.vlgmr.msra.gmra.mxu0 %v1071_v20  ;;  %1555 = vmatmul.mubr.bf16.vlgmr.msra.gmra.mxu1 %v1071_v20 }
 0x561   :  { %v1513_v22 = vpop.f32.mrf.mxu0  ;;  %v1556_v11 = vpop.f32.mrf.mxu1 }
 0x562   :  { %v1514_v23 = vadd.f32 %v1513_v22, %v1142_v47  ;;  %v1557_v24 = vadd.f32 %v1556_v11, %v1150_v48 }
 0x563   :  { %v1515_v37 = vpop.f32.mrf.mxu0  ;;  %v1558_v25 = vpop.f32.mrf.mxu1 }
 0x564   :  { %v1565_v26 = vadd.f32 3.0, %v1514_v23  ;;  %v1567_v56 = vadd.f32 3.0, %v1557_v24  ;;  %v1516_v59 = vadd.f32 %v1515_v37, %v1146_v4  ;;  %v1559_v27 = vadd.f32 %v1558_v25, %v1154_v32 }
 0x565   :  { %v1517_v28 = vpop.f32.mrf.mxu0  ;;  %v1560_v57 = vpop.f32.mrf.mxu1 }
 0x566   :  { %v1573_v29 = vmax.f32 %v1565_v26, 0.0  ;;  %v1575_v7 = vmax.f32 %v1567_v56, 0.0  ;;  %v1566_v0 = vadd.f32 3.0, %v1516_v59  ;;  %v1568_v61 = vadd.f32 3.0, %v1559_v27 }
 0x567   :  { %v1518_v30 = vadd.f32 %v1517_v28, %v1142_v47  ;;  %v1561_v33 = vadd.f32 %v1560_v57, %v1150_v48  ;;  %v1519_v9 = vpop.f32.mrf.mxu0  ;;  %v1562_v3 = vpop.f32.mrf.mxu1 }
 0x568   :  { %v1581_v34 = vmin.f32 %v1573_v29, 6.0  ;;  %v1583_v17 = vmin.f32 %v1575_v7, 6.0  ;;  %v1574_v5 = vmax.f32 %v1566_v0, 0.0  ;;  %v1576_v38 = vmax.f32 %v1568_v61, 0.0 }
 0x569   :  { %v1569_v40 = vadd.f32 3.0, %v1518_v30  ;;  %v1571_v43 = vadd.f32 3.0, %v1561_v33  ;;  %v1520_v18 = vadd.f32 %v1519_v9, %v1146_v4  ;;  %v1563_v8 = vadd.f32 %v1562_v3, %v1154_v32 }
 0x56a   :  { %v1589_v15 = vmul.f32 %v1581_v34, %v1514_v23  ;;  %v1591_v42 = vmul.f32 %v1583_v17, %v1557_v24  ;;  %v1582_v46 = vmin.f32 %v1574_v5, 6.0  ;;  %v1584_v10 = vmin.f32 %v1576_v38, 6.0 }
 0x56b   :  { %v1577_v62 = vmax.f32 %v1569_v40, 0.0  ;;  %v1579_v49 = vmax.f32 %v1571_v43, 0.0  ;;  %v1570_v51 = vadd.f32 3.0, %v1520_v18  ;;  %v1572_v52 = vadd.f32 3.0, %v1563_v8 }
 0x56c   :  { %v1597_v53 = vmul.f32 0.16666667, %v1589_v15  ;;  %v1599_v54 = vmul.f32 0.16666667, %v1591_v42  ;;  %v1590_v55 = vmul.f32 %v1582_v46, %v1516_v59  ;;  %v1592_v35 = vmul.f32 %v1584_v10, %v1559_v27 }
 0x56d   :  { %v1585_v58 = vmin.f32 %v1577_v62, 6.0  ;;  %v1587_v45 = vmin.f32 %v1579_v49, 6.0  ;;  %v1578_v50 = vmax.f32 %v1570_v51, 0.0  ;;  %v1580_v63 = vmax.f32 %v1572_v52, 0.0 }
 0x56e   :  { %1605 = vst [vmem:[%s2723_s13] sm:$0xff] %v1597_v53  ;;  %1607 = vst [vmem:[%s2723_s13 + $0x10] sm:$0xff] %v1599_v54  ;;  %v1598_v31 = vmul.f32 0.16666667, %v1590_v55  ;;  %v1600_v36 = vmul.f32 0.16666667, %v1592_v35 }
 0x56f   :  { %v1593_v1 = vmul.f32 %v1585_v58, %v1518_v30  ;;  %v1595_v2 = vmul.f32 %v1587_v45, %v1561_v33  ;;  %v1586_v12 = vmin.f32 %v1578_v50, 6.0  ;;  %v1588_v13 = vmin.f32 %v1580_v63, 6.0 }
 0x570   :  { %1606 = vst [vmem:[%s2723_s13 + $0x8] sm:$0xff] %v1598_v31  ;;  %1608 = vst [vmem:[%s2723_s13 + $0x18] sm:$0xff] %v1600_v36 }
 0x571   :  { %v1601_v14 = vmul.f32 0.16666667, %v1593_v1  ;;  %v1603_v39 = vmul.f32 0.16666667, %v1595_v2  ;;  %v1594_v16 = vmul.f32 %v1586_v12, %v1520_v18  ;;  %v1596_v19 = vmul.f32 %v1588_v13, %v1563_v8 }
 0x573   :  { %1609 = vst [vmem:[%s2723_s13 + $0x20] sm:$0xff] %v1601_v14  ;;  %1611 = vst [vmem:[%s2723_s13 + $0x30] sm:$0xff] %v1603_v39  ;;  %v1602_v60 = vmul.f32 0.16666667, %v1594_v16  ;;  %v1604_v41 = vmul.f32 0.16666667, %v1596_v19 }
 0x575   :  { %1610 = vst [vmem:[%s2723_s13 + $0x28] sm:$0xff] %v1602_v60  ;;  %1612 = vst [vmem:[%s2723_s13 + $0x38] sm:$0xff] %v1604_v41 }

</bundles_post_ra>
